<compile_context>
chip_gen: v7x
topology: tpu7x:2x2x1
jax: 0.10.0
libtpu: 0.0.40
codegen_flags: <defaults>
</compile_context>

<pallas_src>
import numpy as np
import jax
import jax.numpy as jnp
from jax.experimental import pallas as pl
from jax.experimental.pallas import tpu as pltpu

C = 16                      # in/out channels of every conv
KW1, KW2, KW3 = 3, 5, 7     # horizontal kernel widths


def _pick_batch_block(N, L, LE):
    """Images per grid step: amortize per-step overhead, keep VMEM modest and
    keep >=2 grid steps so a v7x megacore can split the grid."""
    if N <= 1:
        return 1
    per_img = C * (2 * LE + 4 * L + 4 * L) * 2      # double-buffered I/O bytes
    budget = 10 * 1024 * 1024
    for b in (8, 4, 2):
        if N % b == 0 and N // b >= 2 and b * per_img <= budget:
            return b
    return 1


def _make_fused_forward(N, H, W):
    H1, W1 = H + 2, W - 2        # v1 = conv1(x1)
    H2, W2 = H + 4, W - 2        # v2 / v4 (residual x3 must match)
    H3, W3 = H + 6, W - 8        # v5 (output)
    assert W3 > 0 and H >= 1

    # ---- canvas geometry --------------------------------------------------
    S = 1 << int(np.ceil(np.log2(W + 2)))    # row stride (power of two >= W+2)
    R = H3                                   # canvas rows == output rows
    while (R * S) % 128:                     # keep the lane count 128-dense
        S *= 2
    L = R * S                                # flat canvas length (lanes)
    LE = L + 128                             # + slack so +k taps stay in-bounds
    SHIFT = int(np.log2(S))
    # placement (row0, col0) on the canvas:
    #   x1 : rows [3, 3+H)   cols [2, 2+W)
    #   v1 : rows [2, 2+H1)  cols [2, 2+W1)
    #   v4 : rows [1, 1+H2)  cols [0, W2)   (x3 is wrapper-padded to the same spot)
    #   v5 : rows [0, H3)    cols [0, W3)   == the whole canvas rows
    # -> every conv tap kw is a pure +kw lane offset into its input canvas.

    B_blk = _pick_batch_block(N, L, LE)
    GB = N // B_blk

    def kernel(x1_ref, x3_ref, w1_ref, b1_ref, w2_ref, b2_ref, w3_ref, b3_ref,
               o_ref, v1s_ref, v4s_ref):
        # footprint masks -- hoisted, reused by every image of the block
        pos = jax.lax.broadcasted_iota(jnp.int32, (1, L), 1)
        row = pos >> SHIFT
        col = pos & (S - 1)
        m1 = (row >= 2) & (row < 2 + H1) & (col >= 2) & (col < 2 + W1)
        m2 = (row >= 1) & (row < 1 + H2) & (col < W2)

        # +k tap windows of the scratch canvases may peek into the 128 slack
        # lanes -> keep them zero (tiny one-off store per grid step).
        zero_tail = jnp.zeros((C, LE - L), jnp.bfloat16)
        v1s_ref[:, L:] = zero_tail
        v4s_ref[:, L:] = zero_tail

        def conv(get_tap, w_ref, taps):
            # tap-accumulated MXU dots: (C,C)bf16 @ (C,L)bf16 -> f32 acc.
            # Taps are shifted VMEM window reads -> no padded im2col concat.
            acc = jnp.dot(w_ref[0], get_tap(0),
                          preferred_element_type=jnp.float32)
            for k in range(1, taps):
                acc = acc + jnp.dot(w_ref[k], get_tap(k),
                                    preferred_element_type=jnp.float32)
            return acc

        def body(b, carry):
            # conv1 + bias
            y1 = conv(lambda k: x1_ref[b, :, pl.ds(k, L)], w1_ref, KW1)
            v1s_ref[:, :L] = jnp.where(m1, y1 + b1_ref[...],
                                       0.0).astype(jnp.bfloat16)
            # conv2 + bias + residual + relu  (v2 = conv2(v1); v4 = relu(v2+x3))
            y2 = conv(lambda k: v1s_ref[:, pl.ds(k, L)], w2_ref, KW2)
            v4 = jnp.maximum(y2 + b2_ref[...] + x3_ref[b], 0.0)
            v4s_ref[:, :L] = jnp.where(m2, v4, 0.0).astype(jnp.bfloat16)
            # conv3 + bias (no final mask: the wrapper slice discards the rest)
            y3 = conv(lambda k: v4s_ref[:, pl.ds(k, L)], w3_ref, KW3)
            o_ref[b] = y3 + b3_ref[...]
            return carry

        jax.lax.fori_loop(0, B_blk, body, 0)

    def fwd(x1, x3, w1m, b1, w2m, b2, w3m, b3):
        # wrapper-side canvas placement: one fused pad per input (bf16 for the
        # conv1 operand, f32 for the residual) -> no in-kernel placement loops.
        x1c = jnp.pad(x1.astype(jnp.bfloat16),
                      ((0, 0), (0, 0), (3, R - 3 - H), (2, S - 2 - W)))
        x1c = jnp.pad(x1c.reshape(N, C, L), ((0, 0), (0, 0), (0, LE - L)))
        x3c = jnp.pad(x3, ((0, 0), (0, 0), (1, R - 1 - H2), (0, S - W2)))
        x3c = x3c.reshape(N, C, L)

        out = pl.pallas_call(
            kernel,
            grid=(GB,),
            in_specs=[
                pl.BlockSpec((B_blk, C, LE), lambda g: (g, 0, 0)),
                pl.BlockSpec((B_blk, C, L), lambda g: (g, 0, 0)),
                pl.BlockSpec((KW1, C, C), lambda g: (0, 0, 0)),
                pl.BlockSpec((C, 1), lambda g: (0, 0)),
                pl.BlockSpec((KW2, C, C), lambda g: (0, 0, 0)),
                pl.BlockSpec((C, 1), lambda g: (0, 0)),
                pl.BlockSpec((KW3, C, C), lambda g: (0, 0, 0)),
                pl.BlockSpec((C, 1), lambda g: (0, 0)),
            ],
            out_specs=pl.BlockSpec((B_blk, C, L), lambda g: (g, 0, 0)),
            out_shape=jax.ShapeDtypeStruct((N, C, L), jnp.float32),
            scratch_shapes=[pltpu.VMEM((C, LE), jnp.bfloat16),
                            pltpu.VMEM((C, LE), jnp.bfloat16)],
            compiler_params=pltpu.CompilerParams(
                dimension_semantics=("parallel",)),
        )(x1c, x3c, w1m, b1, w2m, b2, w3m, b3)
        # canvas -> NCHW: free reshape + one cheap column slice, no transpose.
        return out.reshape(N, C, H3, S)[:, :, :, :W3]

    return fwd


class PallasModel:
    def __init__(self, key):
        ks = jax.random.split(key, 6)

        def winit(k, kw):       # HWIO: (1, kw, Cin, Cout)
            return jax.random.normal(k, (1, kw, C, C), jnp.float32) * 0.1

        self.w1 = winit(ks[0], KW1)
        self.b1 = jax.random.normal(ks[1], (C,), jnp.float32) * 0.1
        self.w2 = winit(ks[2], KW2)
        self.b2 = jax.random.normal(ks[3], (C,), jnp.float32) * 0.1
        self.w3 = winit(ks[4], KW3)
        self.b3 = jax.random.normal(ks[5], (C,), jnp.float32) * 0.1

        # per-tap matmul weights: (kw, Cout, Cin), bf16 for the MXU
        def tomat(w):
            return jnp.transpose(w[0], (0, 2, 1)).astype(jnp.bfloat16)

        self.w1m, self.w2m, self.w3m = tomat(self.w1), tomat(self.w2), tomat(self.w3)
        self.b1c = self.b1.reshape(C, 1)
        self.b2c = self.b2.reshape(C, 1)
        self.b3c = self.b3.reshape(C, 1)
        self._fwd_cache = {}

    def __call__(self, x1, x2, x3):
        # x2 is unused, as in the reference forward.
        N, _, H, W = x1.shape
        assert x3.shape == (N, C, H + 4, W - 2), "residual must match conv2 output"
        shape_key = (N, H, W)
        if shape_key not in self._fwd_cache:
            self._fwd_cache[shape_key] = jax.jit(_make_fused_forward(N, H, W))
        fwd = self._fwd_cache[shape_key]
        return fwd(x1, x3, self.w1m, self.b1c, self.w2m, self.b2c,
                   self.w3m, self.b3c)


def ref_forward(model, x1, x2, x3):
    """Plain-JAX reference (full f32 precision) used only for correctness."""
    def conv(x, w, b, padding):
        y = jax.lax.conv_general_dilated(
            x, w, window_strides=(1, 1),
            padding=((padding[0], padding[0]), (padding[1], padding[1])),
            dimension_numbers=('NCHW', 'HWIO', 'NCHW'),
            precision=jax.lax.Precision.HIGHEST)
        return y + b.reshape(1, -1, 1, 1)

    v1 = conv(x1, model.w1, model.b1, (1, 0))
    v2 = conv(v1, model.w2, model.b2, (1, 2))
    v4 = jnp.maximum(v2 + x3, 0.0)
    v5 = conv(v4, model.w3, model.b3, (1, 0))
    return v5


if __name__ == "__main__":
    key = jax.random.PRNGKey(0)
    kp, kx1, kx2, kx3 = jax.random.split(key, 4)
    model = PallasModel(kp)

    N, H, W = 2, 8, 32
    x1 = jax.random.normal(kx1, (N, C, H, W), jnp.float32)
    x2 = jax.random.normal(kx2, (N, C, H, W), jnp.float32)   # unused (parity)
    # v2 has spatial shape (H+4, W-2) under our interpretation -> x3 matches it
    x3 = jax.random.normal(kx3, (N, C, H + 4, W - 2), jnp.float32)

    out = jax.block_until_ready(model(x1, x2, x3))

    ref = ref_forward(model, x1, x2, x3)
    # kernel uses bf16 MXU passes with f32 accumulation; reference is full f32
    np.testing.assert_allclose(np.asarray(out), np.asarray(ref),
                               rtol=2e-2, atol=5e-2)
    print("KERNEL_OK")
</pallas_src>

<mosaic_0001>
module attributes {stable_mosaic.version = 11 : i64} {
  func.func @kernel(%arg0: i32, %arg1: memref<1x16x1024xbf16, #tpu.memory_space<vmem>>, %arg2: memref<1x16x896xf32, #tpu.memory_space<vmem>>, %arg3: memref<3x16x16xbf16, #tpu.memory_space<vmem>>, %arg4: memref<16x1xf32, #tpu.memory_space<vmem>>, %arg5: memref<5x16x16xbf16, #tpu.memory_space<vmem>>, %arg6: memref<16x1xf32, #tpu.memory_space<vmem>>, %arg7: memref<7x16x16xbf16, #tpu.memory_space<vmem>>, %arg8: memref<16x1xf32, #tpu.memory_space<vmem>>, %arg9: memref<1x16x896xf32, #tpu.memory_space<vmem>>, %arg10: memref<16x1024xbf16, #tpu.memory_space<vmem>>, %arg11: memref<16x1024xbf16, #tpu.memory_space<vmem>>) attributes {dimension_semantics = [#tpu.dimension_semantics<parallel>], iteration_bounds = array<i64: 2>, scalar_prefetch = 0 : i64, scratch_operands = 2 : i64, tpu.core_type = #tpu.core_type<tc>, window_params = [{transform_indices = @transform_0, window_bounds = array<i64: 1, 16, 1024>}, {transform_indices = @transform_1, window_bounds = array<i64: 1, 16, 896>}, {pipeline_mode = #tpu.pipeline_mode<synchronous>, transform_indices = @transform_2, window_bounds = array<i64: 3, 16, 16>}, {pipeline_mode = #tpu.pipeline_mode<synchronous>, transform_indices = @transform_3, window_bounds = array<i64: 16, 1>}, {pipeline_mode = #tpu.pipeline_mode<synchronous>, transform_indices = @transform_4, window_bounds = array<i64: 5, 16, 16>}, {pipeline_mode = #tpu.pipeline_mode<synchronous>, transform_indices = @transform_5, window_bounds = array<i64: 16, 1>}, {pipeline_mode = #tpu.pipeline_mode<synchronous>, transform_indices = @transform_6, window_bounds = array<i64: 7, 16, 16>}, {pipeline_mode = #tpu.pipeline_mode<synchronous>, transform_indices = @transform_7, window_bounds = array<i64: 16, 1>}, {transform_indices = @transform_8, window_bounds = array<i64: 1, 16, 896>}]} {
    %0 = tpu.iota {dimensions = array<i32: 1>} : vector<1x896xi32>
    %c6_i32 = arith.constant 6 : i32
    %1 = vector.broadcast %c6_i32 : i32 to vector<1x896xi32>
    %2 = arith.shrsi %0, %1 : vector<1x896xi32>
    %c63_i32 = arith.constant 63 : i32
    %3 = vector.broadcast %c63_i32 : i32 to vector<1x896xi32>
    %4 = arith.andi %0, %3 : vector<1x896xi32>
    %c2_i32 = arith.constant 2 : i32
    %5 = vector.broadcast %c2_i32 : i32 to vector<1x896xi32>
    %6 = arith.cmpi sge, %2, %5 : vector<1x896xi32>
    %c12_i32 = arith.constant 12 : i32
    %7 = vector.broadcast %c12_i32 : i32 to vector<1x896xi32>
    %8 = arith.cmpi slt, %2, %7 : vector<1x896xi32>
    %9 = arith.andi %6, %8 : vector<1x896xi1>
    %c2_i32_0 = arith.constant 2 : i32
    %10 = vector.broadcast %c2_i32_0 : i32 to vector<1x896xi32>
    %11 = arith.cmpi sge, %4, %10 : vector<1x896xi32>
    %12 = arith.andi %9, %11 : vector<1x896xi1>
    %c32_i32 = arith.constant 32 : i32
    %13 = vector.broadcast %c32_i32 : i32 to vector<1x896xi32>
    %14 = arith.cmpi slt, %4, %13 : vector<1x896xi32>
    %15 = arith.andi %12, %14 : vector<1x896xi1>
    %c1_i32 = arith.constant 1 : i32
    %16 = vector.broadcast %c1_i32 : i32 to vector<1x896xi32>
    %17 = arith.cmpi sge, %2, %16 : vector<1x896xi32>
    %c13_i32 = arith.constant 13 : i32
    %18 = vector.broadcast %c13_i32 : i32 to vector<1x896xi32>
    %19 = arith.cmpi slt, %2, %18 : vector<1x896xi32>
    %20 = arith.andi %17, %19 : vector<1x896xi1>
    %c30_i32 = arith.constant 30 : i32
    %21 = vector.broadcast %c30_i32 : i32 to vector<1x896xi32>
    %22 = arith.cmpi slt, %4, %21 : vector<1x896xi32>
    %23 = arith.andi %20, %22 : vector<1x896xi1>
    %cst = arith.constant 0.000000e+00 : bf16
    %24 = vector.broadcast %cst : bf16 to vector<16x128xbf16>
    %c0 = arith.constant 0 : index
    %c896 = arith.constant 896 : index
    %25 = vector.load %arg10[%c0, %c896] : memref<16x1024xbf16, #tpu.memory_space<vmem>>, vector<16x128xbf16>
    tpu.vector_store %arg10[%c0, %c896], %24 {strides = array<i32>} : memref<16x1024xbf16, #tpu.memory_space<vmem>>, vector<16x128xbf16>,
    %c0_1 = arith.constant 0 : index
    %c896_2 = arith.constant 896 : index
    %26 = vector.load %arg11[%c0_1, %c896_2] : memref<16x1024xbf16, #tpu.memory_space<vmem>>, vector<16x128xbf16>
    tpu.vector_store %arg11[%c0_1, %c896_2], %24 {strides = array<i32>} : memref<16x1024xbf16, #tpu.memory_space<vmem>>, vector<16x128xbf16>,
    %c0_i32 = arith.constant 0 : i32
    %c0_3 = arith.constant 0 : index
    %c0_4 = arith.constant 0 : index
    %c0_5 = arith.constant 0 : index
    %27 = vector.load %arg3[%c0_3, %c0_4, %c0_5] : memref<3x16x16xbf16, #tpu.memory_space<vmem>>, vector<1x16x16xbf16>
    %28 = vector.shape_cast %27 : vector<1x16x16xbf16> to vector<16x16xbf16>
    %29 = arith.index_cast %c0_i32 : i32 to index
    %c0_6 = arith.constant 0 : index
    %c0_7 = arith.constant 0 : index
    %30 = vector.load %arg1[%29, %c0_6, %c0_7] : memref<1x16x1024xbf16, #tpu.memory_space<vmem>>, vector<1x16x896xbf16>
    %31 = vector.shape_cast %30 : vector<1x16x896xbf16> to vector<16x896xbf16>
    %cst_8 = arith.constant dense<0.000000e+00> : vector<16x896xf32>
    %32 = tpu.matmul %28, %31, %cst_8 {dimension_numbers = #tpu.dot_dimension_numbers<[1], [0], [0], [1], [0, 0, 1, 1], [], []>} : vector<16x16xbf16>, vector<16x896xbf16>, vector<16x896xf32> -> vector<16x896xf32>
    %c1 = arith.constant 1 : index
    %c0_9 = arith.constant 0 : index
    %c0_10 = arith.constant 0 : index
    %33 = vector.load %arg3[%c1, %c0_9, %c0_10] : memref<3x16x16xbf16, #tpu.memory_space<vmem>>, vector<1x16x16xbf16>
    %34 = vector.shape_cast %33 : vector<1x16x16xbf16> to vector<16x16xbf16>
    %35 = arith.index_cast %c0_i32 : i32 to index
    %c0_11 = arith.constant 0 : index
    %c1_12 = arith.constant 1 : index
    %36 = vector.load %arg1[%35, %c0_11, %c1_12] : memref<1x16x1024xbf16, #tpu.memory_space<vmem>>, vector<1x16x896xbf16>
    %37 = vector.shape_cast %36 : vector<1x16x896xbf16> to vector<16x896xbf16>
    %cst_13 = arith.constant dense<0.000000e+00> : vector<16x896xf32>
    %38 = tpu.matmul %34, %37, %cst_13 {dimension_numbers = #tpu.dot_dimension_numbers<[1], [0], [0], [1], [0, 0, 1, 1], [], []>} : vector<16x16xbf16>, vector<16x896xbf16>, vector<16x896xf32> -> vector<16x896xf32>
    %39 = arith.addf %32, %38 : vector<16x896xf32>
    %c2 = arith.constant 2 : index
    %c0_14 = arith.constant 0 : index
    %c0_15 = arith.constant 0 : index
    %40 = vector.load %arg3[%c2, %c0_14, %c0_15] : memref<3x16x16xbf16, #tpu.memory_space<vmem>>, vector<1x16x16xbf16>
    %41 = vector.shape_cast %40 : vector<1x16x16xbf16> to vector<16x16xbf16>
    %42 = arith.index_cast %c0_i32 : i32 to index
    %c0_16 = arith.constant 0 : index
    %c2_17 = arith.constant 2 : index
    %43 = vector.load %arg1[%42, %c0_16, %c2_17] : memref<1x16x1024xbf16, #tpu.memory_space<vmem>>, vector<1x16x896xbf16>
    %44 = vector.shape_cast %43 : vector<1x16x896xbf16> to vector<16x896xbf16>
    %cst_18 = arith.constant dense<0.000000e+00> : vector<16x896xf32>
    %45 = tpu.matmul %41, %44, %cst_18 {dimension_numbers = #tpu.dot_dimension_numbers<[1], [0], [0], [1], [0, 0, 1, 1], [], []>} : vector<16x16xbf16>, vector<16x896xbf16>, vector<16x896xf32> -> vector<16x896xf32>
    %46 = arith.addf %39, %45 : vector<16x896xf32>
    %c0_19 = arith.constant 0 : index
    %c0_20 = arith.constant 0 : index
    %47 = vector.load %arg4[%c0_19, %c0_20] : memref<16x1xf32, #tpu.memory_space<vmem>>, vector<16x1xf32>
    %48 = vector.broadcast %47 : vector<16x1xf32> to vector<16x896xf32>
    %49 = arith.addf %46, %48 : vector<16x896xf32>
    %cst_21 = arith.constant 0.000000e+00 : f32
    %50 = vector.shape_cast %15 : vector<1x896xi1> to vector<1x896xi1>
    %51 = vector.broadcast %50 : vector<1x896xi1> to vector<16x896xi1>
    %52 = vector.broadcast %cst_21 : f32 to vector<16x896xf32>
    %53 = arith.select %51, %49, %52 : vector<16x896xi1>, vector<16x896xf32>
    %54 = arith.truncf %53 : vector<16x896xf32> to vector<16x896xbf16>
    %c0_22 = arith.constant 0 : index
    %c0_23 = arith.constant 0 : index
    %55 = vector.load %arg10[%c0_22, %c0_23] : memref<16x1024xbf16, #tpu.memory_space<vmem>>, vector<16x896xbf16>
    tpu.vector_store %arg10[%c0_22, %c0_23], %54 {strides = array<i32>} : memref<16x1024xbf16, #tpu.memory_space<vmem>>, vector<16x896xbf16>,
    %c0_24 = arith.constant 0 : index
    %c0_25 = arith.constant 0 : index
    %c0_26 = arith.constant 0 : index
    %56 = vector.load %arg5[%c0_24, %c0_25, %c0_26] : memref<5x16x16xbf16, #tpu.memory_space<vmem>>, vector<1x16x16xbf16>
    %57 = vector.shape_cast %56 : vector<1x16x16xbf16> to vector<16x16xbf16>
    %c0_27 = arith.constant 0 : index
    %c0_28 = arith.constant 0 : index
    %58 = vector.load %arg10[%c0_27, %c0_28] : memref<16x1024xbf16, #tpu.memory_space<vmem>>, vector<16x896xbf16>
    %cst_29 = arith.constant dense<0.000000e+00> : vector<16x896xf32>
    %59 = tpu.matmul %57, %58, %cst_29 {dimension_numbers = #tpu.dot_dimension_numbers<[1], [0], [0], [1], [0, 0, 1, 1], [], []>} : vector<16x16xbf16>, vector<16x896xbf16>, vector<16x896xf32> -> vector<16x896xf32>
    %c1_30 = arith.constant 1 : index
    %c0_31 = arith.constant 0 : index
    %c0_32 = arith.constant 0 : index
    %60 = vector.load %arg5[%c1_30, %c0_31, %c0_32] : memref<5x16x16xbf16, #tpu.memory_space<vmem>>, vector<1x16x16xbf16>
    %61 = vector.shape_cast %60 : vector<1x16x16xbf16> to vector<16x16xbf16>
    %c0_33 = arith.constant 0 : index
    %c1_34 = arith.constant 1 : index
    %62 = vector.load %arg10[%c0_33, %c1_34] : memref<16x1024xbf16, #tpu.memory_space<vmem>>, vector<16x896xbf16>
    %cst_35 = arith.constant dense<0.000000e+00> : vector<16x896xf32>
    %63 = tpu.matmul %61, %62, %cst_35 {dimension_numbers = #tpu.dot_dimension_numbers<[1], [0], [0], [1], [0, 0, 1, 1], [], []>} : vector<16x16xbf16>, vector<16x896xbf16>, vector<16x896xf32> -> vector<16x896xf32>
    %64 = arith.addf %59, %63 : vector<16x896xf32>
    %c2_36 = arith.constant 2 : index
    %c0_37 = arith.constant 0 : index
    %c0_38 = arith.constant 0 : index
    %65 = vector.load %arg5[%c2_36, %c0_37, %c0_38] : memref<5x16x16xbf16, #tpu.memory_space<vmem>>, vector<1x16x16xbf16>
    %66 = vector.shape_cast %65 : vector<1x16x16xbf16> to vector<16x16xbf16>
    %c0_39 = arith.constant 0 : index
    %c2_40 = arith.constant 2 : index
    %67 = vector.load %arg10[%c0_39, %c2_40] : memref<16x1024xbf16, #tpu.memory_space<vmem>>, vector<16x896xbf16>
    %cst_41 = arith.constant dense<0.000000e+00> : vector<16x896xf32>
    %68 = tpu.matmul %66, %67, %cst_41 {dimension_numbers = #tpu.dot_dimension_numbers<[1], [0], [0], [1], [0, 0, 1, 1], [], []>} : vector<16x16xbf16>, vector<16x896xbf16>, vector<16x896xf32> -> vector<16x896xf32>
    %69 = arith.addf %64, %68 : vector<16x896xf32>
    %c3 = arith.constant 3 : index
    %c0_42 = arith.constant 0 : index
    %c0_43 = arith.constant 0 : index
    %70 = vector.load %arg5[%c3, %c0_42, %c0_43] : memref<5x16x16xbf16, #tpu.memory_space<vmem>>, vector<1x16x16xbf16>
    %71 = vector.shape_cast %70 : vector<1x16x16xbf16> to vector<16x16xbf16>
    %c0_44 = arith.constant 0 : index
    %c3_45 = arith.constant 3 : index
    %72 = vector.load %arg10[%c0_44, %c3_45] : memref<16x1024xbf16, #tpu.memory_space<vmem>>, vector<16x896xbf16>
    %cst_46 = arith.constant dense<0.000000e+00> : vector<16x896xf32>
    %73 = tpu.matmul %71, %72, %cst_46 {dimension_numbers = #tpu.dot_dimension_numbers<[1], [0], [0], [1], [0, 0, 1, 1], [], []>} : vector<16x16xbf16>, vector<16x896xbf16>, vector<16x896xf32> -> vector<16x896xf32>
    %74 = arith.addf %69, %73 : vector<16x896xf32>
    %c4 = arith.constant 4 : index
    %c0_47 = arith.constant 0 : index
    %c0_48 = arith.constant 0 : index
    %75 = vector.load %arg5[%c4, %c0_47, %c0_48] : memref<5x16x16xbf16, #tpu.memory_space<vmem>>, vector<1x16x16xbf16>
    %76 = vector.shape_cast %75 : vector<1x16x16xbf16> to vector<16x16xbf16>
    %c0_49 = arith.constant 0 : index
    %c4_50 = arith.constant 4 : index
    %77 = vector.load %arg10[%c0_49, %c4_50] : memref<16x1024xbf16, #tpu.memory_space<vmem>>, vector<16x896xbf16>
    %cst_51 = arith.constant dense<0.000000e+00> : vector<16x896xf32>
    %78 = tpu.matmul %76, %77, %cst_51 {dimension_numbers = #tpu.dot_dimension_numbers<[1], [0], [0], [1], [0, 0, 1, 1], [], []>} : vector<16x16xbf16>, vector<16x896xbf16>, vector<16x896xf32> -> vector<16x896xf32>
    %79 = arith.addf %74, %78 : vector<16x896xf32>
    %c0_52 = arith.constant 0 : index
    %c0_53 = arith.constant 0 : index
    %80 = vector.load %arg6[%c0_52, %c0_53] : memref<16x1xf32, #tpu.memory_space<vmem>>, vector<16x1xf32>
    %81 = vector.broadcast %80 : vector<16x1xf32> to vector<16x896xf32>
    %82 = arith.addf %79, %81 : vector<16x896xf32>
    %83 = arith.index_cast %c0_i32 : i32 to index
    %c0_54 = arith.constant 0 : index
    %c0_55 = arith.constant 0 : index
    %84 = vector.load %arg2[%83, %c0_54, %c0_55] : memref<1x16x896xf32, #tpu.memory_space<vmem>>, vector<1x16x896xf32>
    %85 = vector.shape_cast %84 : vector<1x16x896xf32> to vector<16x896xf32>
    %86 = arith.addf %82, %85 : vector<16x896xf32>
    %cst_56 = arith.constant 0.000000e+00 : f32
    %87 = vector.broadcast %cst_56 : f32 to vector<16x896xf32>
    %88 = arith.maximumf %86, %87 : vector<16x896xf32>
    %cst_57 = arith.constant 0.000000e+00 : f32
    %89 = vector.shape_cast %23 : vector<1x896xi1> to vector<1x896xi1>
    %90 = vector.broadcast %89 : vector<1x896xi1> to vector<16x896xi1>
    %91 = vector.broadcast %cst_57 : f32 to vector<16x896xf32>
    %92 = arith.select %90, %88, %91 : vector<16x896xi1>, vector<16x896xf32>
    %93 = arith.truncf %92 : vector<16x896xf32> to vector<16x896xbf16>
    %c0_58 = arith.constant 0 : index
    %c0_59 = arith.constant 0 : index
    %94 = vector.load %arg11[%c0_58, %c0_59] : memref<16x1024xbf16, #tpu.memory_space<vmem>>, vector<16x896xbf16>
    tpu.vector_store %arg11[%c0_58, %c0_59], %93 {strides = array<i32>} : memref<16x1024xbf16, #tpu.memory_space<vmem>>, vector<16x896xbf16>,
    %c0_60 = arith.constant 0 : index
    %c0_61 = arith.constant 0 : index
    %c0_62 = arith.constant 0 : index
    %95 = vector.load %arg7[%c0_60, %c0_61, %c0_62] : memref<7x16x16xbf16, #tpu.memory_space<vmem>>, vector<1x16x16xbf16>
    %96 = vector.shape_cast %95 : vector<1x16x16xbf16> to vector<16x16xbf16>
    %c0_63 = arith.constant 0 : index
    %c0_64 = arith.constant 0 : index
    %97 = vector.load %arg11[%c0_63, %c0_64] : memref<16x1024xbf16, #tpu.memory_space<vmem>>, vector<16x896xbf16>
    %cst_65 = arith.constant dense<0.000000e+00> : vector<16x896xf32>
    %98 = tpu.matmul %96, %97, %cst_65 {dimension_numbers = #tpu.dot_dimension_numbers<[1], [0], [0], [1], [0, 0, 1, 1], [], []>} : vector<16x16xbf16>, vector<16x896xbf16>, vector<16x896xf32> -> vector<16x896xf32>
    %c1_66 = arith.constant 1 : index
    %c0_67 = arith.constant 0 : index
    %c0_68 = arith.constant 0 : index
    %99 = vector.load %arg7[%c1_66, %c0_67, %c0_68] : memref<7x16x16xbf16, #tpu.memory_space<vmem>>, vector<1x16x16xbf16>
    %100 = vector.shape_cast %99 : vector<1x16x16xbf16> to vector<16x16xbf16>
    %c0_69 = arith.constant 0 : index
    %c1_70 = arith.constant 1 : index
    %101 = vector.load %arg11[%c0_69, %c1_70] : memref<16x1024xbf16, #tpu.memory_space<vmem>>, vector<16x896xbf16>
    %cst_71 = arith.constant dense<0.000000e+00> : vector<16x896xf32>
    %102 = tpu.matmul %100, %101, %cst_71 {dimension_numbers = #tpu.dot_dimension_numbers<[1], [0], [0], [1], [0, 0, 1, 1], [], []>} : vector<16x16xbf16>, vector<16x896xbf16>, vector<16x896xf32> -> vector<16x896xf32>
    %103 = arith.addf %98, %102 : vector<16x896xf32>
    %c2_72 = arith.constant 2 : index
    %c0_73 = arith.constant 0 : index
    %c0_74 = arith.constant 0 : index
    %104 = vector.load %arg7[%c2_72, %c0_73, %c0_74] : memref<7x16x16xbf16, #tpu.memory_space<vmem>>, vector<1x16x16xbf16>
    %105 = vector.shape_cast %104 : vector<1x16x16xbf16> to vector<16x16xbf16>
    %c0_75 = arith.constant 0 : index
    %c2_76 = arith.constant 2 : index
    %106 = vector.load %arg11[%c0_75, %c2_76] : memref<16x1024xbf16, #tpu.memory_space<vmem>>, vector<16x896xbf16>
    %cst_77 = arith.constant dense<0.000000e+00> : vector<16x896xf32>
    %107 = tpu.matmul %105, %106, %cst_77 {dimension_numbers = #tpu.dot_dimension_numbers<[1], [0], [0], [1], [0, 0, 1, 1], [], []>} : vector<16x16xbf16>, vector<16x896xbf16>, vector<16x896xf32> -> vector<16x896xf32>
    %108 = arith.addf %103, %107 : vector<16x896xf32>
    %c3_78 = arith.constant 3 : index
    %c0_79 = arith.constant 0 : index
    %c0_80 = arith.constant 0 : index
    %109 = vector.load %arg7[%c3_78, %c0_79, %c0_80] : memref<7x16x16xbf16, #tpu.memory_space<vmem>>, vector<1x16x16xbf16>
    %110 = vector.shape_cast %109 : vector<1x16x16xbf16> to vector<16x16xbf16>
    %c0_81 = arith.constant 0 : index
    %c3_82 = arith.constant 3 : index
    %111 = vector.load %arg11[%c0_81, %c3_82] : memref<16x1024xbf16, #tpu.memory_space<vmem>>, vector<16x896xbf16>
    %cst_83 = arith.constant dense<0.000000e+00> : vector<16x896xf32>
    %112 = tpu.matmul %110, %111, %cst_83 {dimension_numbers = #tpu.dot_dimension_numbers<[1], [0], [0], [1], [0, 0, 1, 1], [], []>} : vector<16x16xbf16>, vector<16x896xbf16>, vector<16x896xf32> -> vector<16x896xf32>
    %113 = arith.addf %108, %112 : vector<16x896xf32>
    %c4_84 = arith.constant 4 : index
    %c0_85 = arith.constant 0 : index
    %c0_86 = arith.constant 0 : index
    %114 = vector.load %arg7[%c4_84, %c0_85, %c0_86] : memref<7x16x16xbf16, #tpu.memory_space<vmem>>, vector<1x16x16xbf16>
    %115 = vector.shape_cast %114 : vector<1x16x16xbf16> to vector<16x16xbf16>
    %c0_87 = arith.constant 0 : index
    %c4_88 = arith.constant 4 : index
    %116 = vector.load %arg11[%c0_87, %c4_88] : memref<16x1024xbf16, #tpu.memory_space<vmem>>, vector<16x896xbf16>
    %cst_89 = arith.constant dense<0.000000e+00> : vector<16x896xf32>
    %117 = tpu.matmul %115, %116, %cst_89 {dimension_numbers = #tpu.dot_dimension_numbers<[1], [0], [0], [1], [0, 0, 1, 1], [], []>} : vector<16x16xbf16>, vector<16x896xbf16>, vector<16x896xf32> -> vector<16x896xf32>
    %118 = arith.addf %113, %117 : vector<16x896xf32>
    %c5 = arith.constant 5 : index
    %c0_90 = arith.constant 0 : index
    %c0_91 = arith.constant 0 : index
    %119 = vector.load %arg7[%c5, %c0_90, %c0_91] : memref<7x16x16xbf16, #tpu.memory_space<vmem>>, vector<1x16x16xbf16>
    %120 = vector.shape_cast %119 : vector<1x16x16xbf16> to vector<16x16xbf16>
    %c0_92 = arith.constant 0 : index
    %c5_93 = arith.constant 5 : index
    %121 = vector.load %arg11[%c0_92, %c5_93] : memref<16x1024xbf16, #tpu.memory_space<vmem>>, vector<16x896xbf16>
    %cst_94 = arith.constant dense<0.000000e+00> : vector<16x896xf32>
    %122 = tpu.matmul %120, %121, %cst_94 {dimension_numbers = #tpu.dot_dimension_numbers<[1], [0], [0], [1], [0, 0, 1, 1], [], []>} : vector<16x16xbf16>, vector<16x896xbf16>, vector<16x896xf32> -> vector<16x896xf32>
    %123 = arith.addf %118, %122 : vector<16x896xf32>
    %c6 = arith.constant 6 : index
    %c0_95 = arith.constant 0 : index
    %c0_96 = arith.constant 0 : index
    %124 = vector.load %arg7[%c6, %c0_95, %c0_96] : memref<7x16x16xbf16, #tpu.memory_space<vmem>>, vector<1x16x16xbf16>
    %125 = vector.shape_cast %124 : vector<1x16x16xbf16> to vector<16x16xbf16>
    %c0_97 = arith.constant 0 : index
    %c6_98 = arith.constant 6 : index
    %126 = vector.load %arg11[%c0_97, %c6_98] : memref<16x1024xbf16, #tpu.memory_space<vmem>>, vector<16x896xbf16>
    %cst_99 = arith.constant dense<0.000000e+00> : vector<16x896xf32>
    %127 = tpu.matmul %125, %126, %cst_99 {dimension_numbers = #tpu.dot_dimension_numbers<[1], [0], [0], [1], [0, 0, 1, 1], [], []>} : vector<16x16xbf16>, vector<16x896xbf16>, vector<16x896xf32> -> vector<16x896xf32>
    %128 = arith.addf %123, %127 : vector<16x896xf32>
    %c0_100 = arith.constant 0 : index
    %c0_101 = arith.constant 0 : index
    %129 = vector.load %arg8[%c0_100, %c0_101] : memref<16x1xf32, #tpu.memory_space<vmem>>, vector<16x1xf32>
    %130 = vector.broadcast %129 : vector<16x1xf32> to vector<16x896xf32>
    %131 = arith.addf %128, %130 : vector<16x896xf32>
    %132 = arith.index_cast %c0_i32 : i32 to index
    %c0_102 = arith.constant 0 : index
    %c0_103 = arith.constant 0 : index
    %133 = vector.load %arg9[%132, %c0_102, %c0_103] : memref<1x16x896xf32, #tpu.memory_space<vmem>>, vector<1x16x896xf32>
    %134 = vector.shape_cast %133 : vector<1x16x896xf32> to vector<16x896xf32>
    %135 = vector.shape_cast %131 : vector<16x896xf32> to vector<1x16x896xf32>
    tpu.vector_store %arg9[%132, %c0_102, %c0_103], %135 {strides = array<i32>} : memref<1x16x896xf32, #tpu.memory_space<vmem>>, vector<1x16x896xf32>,
    %c1_i32_104 = arith.constant 1 : i32
    return
  }
  func.func @transform_0(%arg0: i32) -> (i32, i32, i32) {
    %c0_i32 = arith.constant 0 : i32
    %c0_i32_0 = arith.constant 0 : i32
    %c0_i32_1 = arith.constant 0 : i32
    return %arg0, %c0_i32, %c0_i32_0 : i32, i32, i32
  }
  func.func @transform_1(%arg0: i32) -> (i32, i32, i32) {
    %c0_i32 = arith.constant 0 : i32
    %c0_i32_0 = arith.constant 0 : i32
    %c0_i32_1 = arith.constant 0 : i32
    return %arg0, %c0_i32, %c0_i32_0 : i32, i32, i32
  }
  func.func @transform_2(%arg0: i32) -> (i32, i32, i32) {
    %c0_i32 = arith.constant 0 : i32
    %c0_i32_0 = arith.constant 0 : i32
    %c0_i32_1 = arith.constant 0 : i32
    %c0_i32_2 = arith.constant 0 : i32
    return %c0_i32, %c0_i32_0, %c0_i32_1 : i32, i32, i32
  }
  func.func @transform_3(%arg0: i32) -> (i32, i32) {
    %c0_i32 = arith.constant 0 : i32
    %c0_i32_0 = arith.constant 0 : i32
    %c0_i32_1 = arith.constant 0 : i32
    return %c0_i32, %c0_i32_0 : i32, i32
  }
  func.func @transform_4(%arg0: i32) -> (i32, i32, i32) {
    %c0_i32 = arith.constant 0 : i32
    %c0_i32_0 = arith.constant 0 : i32
    %c0_i32_1 = arith.constant 0 : i32
    %c0_i32_2 = arith.constant 0 : i32
    return %c0_i32, %c0_i32_0, %c0_i32_1 : i32, i32, i32
  }
  func.func @transform_5(%arg0: i32) -> (i32, i32) {
    %c0_i32 = arith.constant 0 : i32
    %c0_i32_0 = arith.constant 0 : i32
    %c0_i32_1 = arith.constant 0 : i32
    return %c0_i32, %c0_i32_0 : i32, i32
  }
  func.func @transform_6(%arg0: i32) -> (i32, i32, i32) {
    %c0_i32 = arith.constant 0 : i32
    %c0_i32_0 = arith.constant 0 : i32
    %c0_i32_1 = arith.constant 0 : i32
    %c0_i32_2 = arith.constant 0 : i32
    return %c0_i32, %c0_i32_0, %c0_i32_1 : i32, i32, i32
  }
  func.func @transform_7(%arg0: i32) -> (i32, i32) {
    %c0_i32 = arith.constant 0 : i32
    %c0_i32_0 = arith.constant 0 : i32
    %c0_i32_1 = arith.constant 0 : i32
    return %c0_i32, %c0_i32_0 : i32, i32
  }
  func.func @transform_8(%arg0: i32) -> (i32, i32, i32) {
    %c0_i32 = arith.constant 0 : i32
    %c0_i32_0 = arith.constant 0 : i32
    %c0_i32_1 = arith.constant 0 : i32
    return %arg0, %c0_i32, %c0_i32_0 : i32, i32, i32
  }
}

</mosaic_0001>

<bundles_post_ra>
// kernel: fwd.1
= control target key start
LH: loop header
LB: loop body
LE: loop exit
PB: predicated region body
PF: predicated region fallthrough
CT: control target
= control target key end

     0   :  { %s4584_s27 = smov 0   ;;  %s5634_s0 = inlined_call_operand.vmem [shape: bf16[2,16,1024], index: 0, kind: input, shape index: {}]   ;;  %s5635_s1 = inlined_call_operand.vmem [shape: f32[2,16,896], index: 1, kind: input, shape index: {}]   ;;  %s5636_s2 = inlined_call_operand.vmem [shape: bf16[3,16,16], index: 2, kind: input, shape index: {}]   ;;  %s5637_s3 = inlined_call_operand.vmem [shape: f32[16,1], index: 3, kind: input, shape index: {}]   ;;  %s5638_s4 = inlined_call_operand.vmem [shape: bf16[5,16,16], index: 4, kind: input, shape index: {}]   ;;  %s5639_s5 = inlined_call_operand.vmem [shape: f32[16,1], index: 5, kind: input, shape index: {}]   ;;  %s5640_s6 = inlined_call_operand.vmem [shape: bf16[7,16,16], index: 6, kind: input, shape index: {}]   ;;  %s5641_s7 = inlined_call_operand.vmem [shape: f32[16,1], index: 7, kind: input, shape index: {}]   ;;  %s5642_s8 = inlined_call_operand.vmem [shape: f32[2,16,896], index: 8, kind: output, shape index: {}]  }
   0x1 LB: > { %s4055_s28 = sadd.s32 4294967295, %s4528_s27   ;;  %p4059_p0 = scmp.ge.s32.totalorder %s4528_s27, 1  ;;  %s4528_s27 = sphi %s4584_s27, %s18_s27  }
   0x2   : > { %p272_p1 = scmp.lt.s32.totalorder %s4528_s27, 3 }
   0x4   : > { %p273_p2 = pnand %p4059_p0, %p272_p1 }
   0x5   : > { %p311_p3 = scmp.lt.s32.totalorder (!%p273_p2), %s4055_s28, 1  ;;  %v4530_v0 = vmov (!%p273_p2), 0   ;;  %s4531_s11 = smov (!%p273_p2), 127   ;;  %v1138_v17 = vld [vmem:[%s5637_s3] sm:$0xff] (!%p273_p2)  ;;  %v1139_v18 = vld [vmem:[%s5637_s3 + $0x8] sm:$0xff] (!%p273_p2)  ;;  %vm5649_vm0 = vcmask (!%p273_p2), 1039360   ;;  %v327_v56 = vlaneseq (!%p273_p2) }
   0x6   : > { %276 = sbr.rel (%p273_p2) target bundleno = 1264 (0x4f0), region = 52  ;;  %603 = vmatprep.mubr.bf16.mxu1 (!%p273_p2), %v4530_v0  ;;  %560 = vmatprep.mubr.bf16.mxu0 (!%p273_p2), %v4530_v0  ;;  %s4532_s12 = smov (!%p273_p2), 126   ;;  %v4507_v26 = vld [vmem:[%s5636_s2 + $0x8] sm:$0xff] (!%p273_p2)   ;;  %vm5646_vm1 = vcmask (!%p273_p2), 130048   ;;  %v4533_v28 = vmov (!%p273_p2), 0.0   ;;  %vm5644_vm2 = vmmov (!%p273_p2), 0  }
   0x7   : > { %4505 = vset.pattern.permute.xlu0 (!%p273_p2), %v4530_v0  ;;  %4506 = vset.pattern.permute.xlu1 (!%p273_p2), %v4530_v0  ;;  %v4508_v40 = vld [vmem:[%s5636_s2] sm:$0xff] (!%p273_p2)   ;;  %vm5643_vm3 = vcmask (!%p273_p2), 1031168   ;;  %v4509_v53 = vld [vmem:[%s5636_s2 + $0x10] sm:$0xff] (!%p273_p2)   ;;  %v328_v57 = vand.u32 (!%p273_p2), 127, %v327_v56  ;;  %s4535_s23 = smov (!%p273_p2), 125   ;;  %s4536_s24 = smov (!%p273_p2), 124  }
   0x9   : > { %v330_v62 = vadd.s32 (!%p273_p2), 256, %v328_v57 }
   0xb   : > { %v4719_v63 = vshra.s32 (!%p273_p2), %v330_v62, 6 }
   0xd   : > { %s5786_s28 = smov (!%p311_p3, %s4055_s28), 1  ;;  %vm351_vm4 = vcmp.ge.s32.totalorder %v4719_v63, 2  ;;  %vm358_vm5 = vcmp.lt.s32.totalorder %v4719_v63, 12 }
   0xe   : > { %s4180_s29 = sshll.u32 %s5786_s28, 6  ;;  %vm365_vm6 = vmand %vm351_vm4, %vm358_vm5  ;;  %s4487_s21 = smul.u32 112, %s5786_s28 }
   0xf   : > { %s4598_s10 = scalar_lea.vmem %s5634_s0, %s4180_s29 }
  0x10   : > { %v449_v1 = vld [vmem:[%s4598_s10 + $0x8] sm:$0xff]  ;;  %v448_v3 = vld [vmem:[%s4598_s10] sm:$0xff]  ;;  %v450_v6 = vld [vmem:[%s4598_s10 + $0x10] sm:$0xff]  ;;  %s5180_s26 = scalar_lea.vmem %s5635_s1, %s4487_s21 }
  0x11   : > { %v453_v2 = vld [vmem:[%s4598_s10 + $0x28] sm:$0xff]  ;;  %v452_v5 = vld [vmem:[%s4598_s10 + $0x20] sm:$0xff]  ;;  %v454_v7 = vld [vmem:[%s4598_s10 + $0x30] sm:$0xff] }
  0x12   : > { %v4607_v4 = vcombine.high %v449_v1, %v453_v2  ;;  %v4612_v8 = vcombine.high %v448_v3, %v452_v5  ;;  %v4616_v9 = vcombine.low %v450_v6, %v454_v7  ;;  %v4618_v10 = vcombine.low %v449_v1, %v453_v2  ;;  %v451_v11 = vld [vmem:[%s4598_s10 + $0x18] sm:$0xff] }
  0x13   : > { %v455_v12 = vld [vmem:[%s4598_s10 + $0x38] sm:$0xff]  ;;  %v4624_v13 = vcombine.low %v448_v3, %v452_v5  ;;  %v4630_v14 = vcombine.high %v450_v6, %v454_v7  ;;  %v331_v1 = vadd.s32 384, %v328_v57  ;;  %v4721_v2 = vand.u32 63, %v330_v62 }
  0x14   : > { %499 = vrot.lane.b32.xlu0 %v4607_v4, %s4531_s11  ;;  %495 = vrot.lane.b32.xlu1 %v4612_v8, %s4531_s11  ;;  %v4073_v15 = vcombine.low %v451_v11, %v455_v12  ;;  %v4074_v16 = vcombine.high %v451_v11, %v455_v12  ;;  %v440_v37 = vld [vmem:[%s4598_s10 + $0x18] sm:$0xf]  ;;  %v329_v3 = vadd.s32 128, %v328_v57  ;;  %v4728_v5 = vshra.s32 %v328_v57, 6 }
  0x15   : > { %v444_v38 = vld [vmem:[%s4598_s10 + $0x38] sm:$0xf]  ;;  %vm372_vm7 = vcmp.ge.s32.totalorder %v4721_v2, 2  ;;  %vm386_vm9 = vcmp.lt.s32.totalorder %v4721_v2, 32  ;;  %v4739_v12 = vand.u32 63, %v328_v57 }
  0x16   : > { %v4086_v41 = vcombine.low %v440_v37, %v444_v38  ;;  %v4730_v7 = vshra.s32 %v329_v3, 6  ;;  %vm379_vm8 = vmand %vm365_vm6, %vm372_vm7  ;;  %vm349_vm12 = vcmp.ge.s32.totalorder %v4728_v5, 2  ;;  %vm356_vm13 = vcmp.lt.s32.totalorder %v4728_v5, 12 }
  0x17   : > { %vm4747_vm14 = vmand %vm379_vm8, %vm386_vm9 }
  0x18   : > { %501 = vrot.lane.b32.xlu0 %v4616_v9, %s4531_s11  ;;  %497 = vrot.lane.b32.xlu1 %v4618_v10, %s4531_s11  ;;  %vm350_vm15 = vcmp.ge.s32.totalorder %v4730_v7, 2  ;;  %vm357_vm4 = vcmp.lt.s32.totalorder %v4730_v7, 12  ;;  %vm363_vm7 = vmand %vm349_vm12, %vm356_vm13  ;;  %vm384_vm13 = vcmp.lt.s32.totalorder %v4739_v12, 32 }
  0x19   : > { %vm4763_vm8 = vmand %vm350_vm15, %vm357_vm4 }
  0x1c   : > { %493 = vrot.lane.b32.xlu0 %v4624_v13, %s4531_s11  ;;  %503 = vrot.lane.b32.xlu1 %v4630_v14, %s4531_s11 }
  0x20   : > { %505 = vrot.lane.b32.xlu0 %v4073_v15, %s4531_s11  ;;  %507 = vrot.lane.b32.xlu1 %v4074_v16, %s4531_s11 }
  0x24   : > { %926 = vrot.lane.b32.xlu0 %v4607_v4, %s4532_s12  ;;  %928 = vrot.lane.b32.xlu1 %v4616_v9, %s4532_s12 }
  0x28   : > { %922 = vrot.lane.b32.xlu0 %v4612_v8, %s4532_s12  ;;  %924 = vrot.lane.b32.xlu1 %v4618_v10, %s4532_s12 }
  0x2c   : > { %920 = vrot.lane.b32.xlu0 %v4624_v13, %s4532_s12  ;;  %930 = vrot.lane.b32.xlu1 %v4630_v14, %s4532_s12 }
  0x30   : > { %932 = vrot.lane.b32.xlu0 %v4073_v15, %s4532_s12  ;;  %934 = vrot.lane.b32.xlu1 %v4074_v16, %s4532_s12  ;;  %v4745_v16 = vand.u32 63, %v329_v3 }
  0x32   : > { %vm371_vm9 = vcmp.ge.s32.totalorder %v4745_v16, 2  ;;  %vm385_vm15 = vcmp.lt.s32.totalorder %v4745_v16, 32 }
  0x33   : > { %vm4797_vm4 = vmand %vm4763_vm8, %vm371_vm9 }
  0x34   : > { %1142 = vperm.xlu0 %4505, %v1138_v17   ;;  %1147 = vperm.xlu1 %4506, %v1139_v18   ;;  %v332_v17 = vadd.s32 512, %v328_v57 }
  0x86   : > { %v500_v19 = vpop.permute.xlu0 %499  ;;  %v496_v20 = vpop.permute.xlu1 %495 }
  0x8a   : > { %v502_v21 = vpop.permute.xlu0 %501  ;;  %v498_v22 = vpop.permute.xlu1 %497 }
  0x8b   : > { %v513_v23 = vsel %vm5649_vm0, %v500_v19, %v502_v21  ;;  %v511_v24 = vsel %vm5649_vm0, %v496_v20, %v498_v22  ;;  %v512_v25 = vsel %vm5649_vm0, %v498_v22, %v500_v19  ;;  %v333_v19 = vadd.s32 640, %v328_v57 }
  0x8c   : > { %571 = vmatprep.subr.bf16.mxu1 %v513_v23  ;;  %528 = vmatprep.subr.bf16.mxu0 %v511_v24  ;;  %v4768_v24 = vshra.s32 %v332_v17, 6 }
  0x8d   : > { %572 = vmatpush1.bf16.msra.mxu1 %v512_v25 }
  0x8e   : > { %v494_v27 = vpop.permute.xlu0 %493  ;;  %4253 = vmatprep.subr.bf16.mxu1 %v4533_v28  ;;  %v504_v29 = vpop.permute.xlu1 %503  ;;  %vm353_vm8 = vcmp.ge.s32.totalorder %v4768_v24, 2  ;;  %vm360_vm9 = vcmp.lt.s32.totalorder %v4768_v24, 12 }
  0x8f   : > { %v510_v30 = vsel %vm5649_vm0, %v494_v27, %v496_v20  ;;  %v514_v34 = vsel %vm5649_vm0, %v502_v21, %v504_v29 }
  0x90   : > { %529 = vmatpush1.bf16.msra.mxu0 %v510_v30  ;;  %4076 = vmatmul.mubr.msk.bf16.vlgmr.msra.gmra.mrb[0].mxu1 %vm5646_vm1, %v4507_v26 }
  0x91   : > { %4255 = vmatprep.mubr.msk.bf16.mxu1 %vm5644_vm2, %v4533_v28 }
  0x92   : > { %v506_v31 = vpop.permute.xlu0 %505  ;;  %v508_v32 = vpop.permute.xlu1 %507 }
  0x93   : > { %4075 = vmatmul.mubr.msk.bf16.vlgmr.msra.gmra.mrb[0].mxu0 %vm5646_vm1, %v4507_v26  ;;  %v515_v33 = vsel %vm5649_vm0, %v504_v29, %v506_v31  ;;  %v516_v35 = vsel %vm5649_vm0, %v506_v31, %v508_v32  ;;  %v4777_v29 = vshra.s32 %v333_v19, 6 }
  0x94   : > { %614 = vmatprep.subr.bf16.mxu0 %v515_v33  ;;  %646 = vmatprep.mubr.bf16.mxu0 %v4530_v0  ;;  %v4788_v33 = vand.u32 63, %v332_v17 }
  0x95   : > { %615 = vmatpush1.bf16.msra.mxu0 %v514_v34  ;;  %4254 = vmatpush3.bf16.msra.mxu1 %v516_v35 }
  0x96   : > { %785 = vmatprep.subr.bf16.mxu1 %v4607_v4  ;;  %742 = vmatprep.subr.bf16.mxu0 %v4612_v8  ;;  %v927_v36 = vpop.permute.xlu0 %926  ;;  %v929_v39 = vpop.permute.xlu1 %928  ;;  %v4725_v4 = vshra.s32 %v331_v1, 6 }
  0x97   : > { %v940_v43 = vsel %vm5643_vm3, %v927_v36, %v929_v39 }
  0x98   : > { %4256 = vmatmul.mubr.msk.bf16.vlgmr.msra.gmra.mrb[4].mxu1 %vm5646_vm1, %v4507_v26  ;;  %vm352_vm10 = vcmp.ge.s32.totalorder %v4725_v4, 2  ;;  %vm359_vm11 = vcmp.lt.s32.totalorder %v4725_v4, 12 }
  0x99   : > { %786 = vmatpush1.bf16.msra.mxu1 %v4618_v10  ;;  %817 = vmatprep.mubr.bf16.mxu1 %v4530_v0  ;;  %v4735_v10 = vand.u32 63, %v331_v1  ;;  %vm366_vm5 = vmand %vm352_vm10, %vm359_vm11 }
  0x9a   : > { %4259 = vmatprep.subr.bf16.mxu1 %v4533_v28  ;;  %v923_v42 = vpop.permute.xlu0 %922  ;;  %v925_v44 = vpop.permute.xlu1 %924 }
  0x9b   : > { %4077 = vmatmul.mubr.msk.bf16.vlgmr.msra.gmra.mrb[4].mxu0 %vm5646_vm1, %v4507_v26  ;;  %v938_v45 = vsel %vm5643_vm3, %v923_v42, %v925_v44  ;;  %v939_v47 = vsel %vm5643_vm3, %v925_v44, %v927_v36  ;;  %vm373_vm6 = vcmp.ge.s32.totalorder %v4735_v10, 2  ;;  %vm387_vm11 = vcmp.lt.s32.totalorder %v4735_v10, 32 }
  0x9c   : > { %743 = vmatpush1.bf16.msra.mxu0 %v4624_v13  ;;  %774 = vmatprep.mubr.bf16.mxu0 %v4530_v0  ;;  %v334_v13 = vadd.s32 768, %v328_v57  ;;  %vm4770_vm10 = vmand %vm366_vm5, %vm373_vm6 }
  0x9d   : > { %828 = vmatprep.subr.bf16.mxu0 %v4630_v14 }
  0x9e   : > { %v921_v46 = vpop.permute.xlu0 %920  ;;  %v931_v48 = vpop.permute.xlu1 %930  ;;  %v4759_v21 = vshra.s32 %v334_v13, 6  ;;  %v4761_v22 = vand.u32 63, %v334_v13 }
  0x9f   : > { %v937_v50 = vsel %vm5643_vm3, %v921_v46, %v923_v42  ;;  %v941_v55 = vsel %vm5643_vm3, %v929_v39, %v931_v48  ;;  %v4511_v42 = vld [vmem:[%s5638_s4] sm:$0xff]  }
  0xa0   : > { %4088 = vmatmul.mubr.msk.bf16.vlgmr.msra.gmra.mrb[0].mxu1 %vm5646_vm1, %v4508_v40  ;;  %vm362_vm5 = vcmp.lt.s32.totalorder %v4759_v21, 12  ;;  %vm376_vm6 = vcmp.ge.s32.totalorder %v4761_v22, 2 }
  0xa1   : > { %4260 = vmatpush3.bf16.msra.mxu1 %v4086_v41  ;;  %4261 = vmatprep.mubr.msk.bf16.mxu1 %vm5644_vm2, %v4533_v28  ;;  %v4817_v41 = vand.u32 63, %v333_v19 }
  0xa2   : > { %997 = vmatprep.subr.bf16.mxu1 %v940_v43  ;;  %v933_v49 = vpop.permute.xlu0 %932  ;;  %v935_v52 = vpop.permute.xlu1 %934 }
  0xa3   : > { %4087 = vmatmul.mubr.msk.bf16.vlgmr.msra.gmra.mrb[0].mxu0 %vm5646_vm1, %v4508_v40  ;;  %v942_v51 = vsel %vm5643_vm3, %v931_v48, %v933_v49  ;;  %v943_v54 = vsel %vm5643_vm3, %v933_v49, %v935_v52  ;;  %vm370_vm3 = vcmp.ge.s32.totalorder %v4739_v12, 2 }
  0xa4   : > { %829 = vmatpush1.bf16.msra.mxu0 %v4616_v9  ;;  %860 = vmatprep.mubr.bf16.mxu0 %v4530_v0  ;;  %vm4782_vm12 = vmand %vm363_vm7, %vm370_vm3  ;;  %vm355_vm3 = vcmp.ge.s32.totalorder %v4759_v21, 2 }
  0xa5   : > { %954 = vmatprep.subr.bf16.mxu0 %v938_v45  ;;  %vm4808_vm7 = vmand %vm4770_vm10, %vm387_vm11  ;;  %vm354_vm10 = vcmp.ge.s32.totalorder %v4777_v29, 2  ;;  %vm361_vm11 = vcmp.lt.s32.totalorder %v4777_v29, 12 }
  0xa8   : > { %4262 = vmatmul.mubr.msk.bf16.vlgmr.msra.gmra.mrb[8].mxu1 %vm5646_vm1, %v4508_v40 }
  0xa9   : > { %998 = vmatpush1.bf16.msra.mxu1 %v939_v47  ;;  %1029 = vmatprep.mubr.bf16.mxu1 %v4530_v0 }
  0xaa   : > { %4265 = vmatprep.subr.bf16.mxu1 %v4533_v28 }
  0xab   : > { %4089 = vmatmul.mubr.msk.bf16.vlgmr.msra.gmra.mrb[4].mxu0 %vm5646_vm1, %v4508_v40 }
  0xac   : > { %955 = vmatpush1.bf16.msra.mxu0 %v937_v50  ;;  %986 = vmatprep.mubr.bf16.mxu0 %v4530_v0 }
  0xad   : > { %1040 = vmatprep.subr.bf16.mxu0 %v942_v51 }
  0xb0   : > { %4095 = vmatmul.mubr.msk.bf16.vlgmr.msra.gmra.mrb[0].mxu1 %vm5646_vm1, %v4509_v53 }
  0xb1   : > { %4266 = vmatpush3.bf16.msra.mxu1 %v943_v54  ;;  %4267 = vmatprep.mubr.msk.bf16.mxu1 %vm5644_vm2, %v4533_v28  ;;  %vm4823_vm2 = vmand %vm4782_vm12, %vm384_vm13 }
  0xb2   : > { %vm4847_vm12 = vmand %vm4797_vm4, %vm385_vm15  ;;  %vm374_vm4 = vcmp.ge.s32.totalorder %v4788_v33, 2 }
  0xb3   : > { %4094 = vmatmul.mubr.msk.bf16.vlgmr.msra.gmra.mrb[0].mxu0 %vm5646_vm1, %v4509_v53  ;;  %v4756_v20 = vpop.permute.xlu0 %1142  ;;  %v4775_v27 = vpop.permute.xlu1 %1147  ;;  %vm4868_vm13 = vmand %vm355_vm3, %vm362_vm5  ;;  %vm390_vm3 = vcmp.lt.s32.totalorder %v4761_v22, 32 }
  0xb4   : > { %1041 = vmatpush1.bf16.msra.mxu0 %v941_v55  ;;  %1072 = vmatprep.mubr.bf16.mxu0 %v4530_v0  ;;  %vm4884_vm15 = vmand %vm353_vm8, %vm360_vm9  ;;  %vm375_vm8 = vcmp.ge.s32.totalorder %v4817_v41, 2 }
  0xb5   : > { %vm4902_vm5 = vmand %vm354_vm10, %vm361_vm11  ;;  %vm388_vm11 = vcmp.lt.s32.totalorder %v4788_v33, 32 }
  0xb6   : > { %vm383_vm9 = vmand %vm4868_vm13, %vm376_vm6  ;;  %vm389_vm13 = vcmp.lt.s32.totalorder %v4817_v41, 32 }
  0xb7   : > { %vm381_vm10 = vmand %vm4884_vm15, %vm374_vm4 }
  0xb8   : > { %4268 = vmatmul.mubr.msk.bf16.vlgmr.msra.gmra.mrb[12].mxu1 %vm5646_vm1, %v4509_v53  ;;  %vm382_vm6 = vmand %vm4902_vm5, %vm375_vm8 }
  0xb9   : > { %1347 = vmatprep.mubr.bf16.mxu1 %v4530_v0  ;;  %vm4951_vm15 = vmand %vm381_vm10, %vm388_vm11  ;;  %vm5680_vm10 = vmmov 0  }
  0xba   : > { %vm4958_vm4 = vmand %vm382_vm6, %vm389_vm13 }
  0xbb   : > { %4096 = vmatmul.mubr.msk.bf16.vlgmr.msra.gmra.mrb[4].mxu0 %vm5646_vm1, %v4509_v53  ;;  %vm4935_vm1 = vmand %vm383_vm9, %vm390_vm3  ;;  %vm5678_vm3 = vcmask 130048  }
  0xbc   : > { %1304 = vmatprep.mubr.bf16.mxu0 %v4530_v0  ;;  %vm4181_vm5 = vmpackc.low %vm4847_vm12, %vm4847_vm12 }
  0xbd   : > { %vm4187_vm8 = vmpackc.low %vm4808_vm7, %vm4808_vm7 }
  0xbe   : > { %vm5679_vm9 = vmmov %vm5678_vm3 }
  0xbf   : > { %vm5681_vm11 = vmmov %vm5678_vm3 }
  0xc0   : > { %vm5682_vm6 = vmmov %vm5678_vm3 }
  0xc1   : > { %vm4196_vm13 = vmpackc.low %vm4951_vm15, %vm4951_vm15 }
 0x16b   : > { %v691_v58 = vpop.f32.mrb[4].mxu1 }
 0x16c   : > { %v4257_v59 = vpop.f32.mrb[5].mxu1 }
 0x16d   : > { %v694_v60 = vpop.f32.mrb[6].mxu1 }
 0x16e   : > { %v4258_v61 = vpop.f32.mrb[7].mxu1 }
 0x17b   : > { %v905_v6 = vpop.f32.mrb[8].mxu1 }
 0x17c   : > { %v4732_v8 = vadd.f32 %v905_v6, %v691_v58  ;;  %v4263_v9 = vpop.f32.mrb[9].mxu1 }
 0x17d   : > { %v908_v11 = vpop.f32.mrb[10].mxu1 }
 0x17e   : > { %v4742_v14 = vadd.f32 %v908_v11, %v694_v60  ;;  %v4264_v15 = vpop.f32.mrb[11].mxu1 }
 0x183   : > { %v1031_v25 = vpop.f32.mrb[0].mxu1 }
 0x184   : > { %v4780_v30 = vadd.f32 %v4756_v20, %v1031_v25  ;;  %v1033_v31 = vpop.f32.mrb[1].mxu1 }
 0x185   : > { %v4791_v34 = vadd.f32 %v4756_v20, %v1033_v31  ;;  %v1035_v35 = vpop.f32.mrb[2].mxu1 }
 0x186   : > { %v4813_v38 = vadd.f32 %v4775_v27, %v1035_v35  ;;  %v988_v39 = vpop.f32.mrb[0].mxu0  ;;  %v1037_v40 = vpop.f32.mrb[3].mxu1  ;;  %v1180_v46 = vsel %vm4747_vm14, %v4780_v30, 0.0 }
 0x187   : > { %v4828_v43 = vadd.f32 %v4756_v20, %v988_v39  ;;  %v4831_v44 = vadd.f32 %v4775_v27, %v1037_v40  ;;  %v990_v45 = vpop.f32.mrb[1].mxu0  ;;  %v1181_v52 = vsel %vm4808_vm7, %v4791_v34, 0.0 }
 0x188   : > { %v1187_v47 = vsel %vm4747_vm14, %v4813_v38, 0.0  ;;  %v4191_v48 = vpack.c.bf16 %v4813_v38, %v4780_v30  ;;  %v4852_v50 = vadd.f32 %v4756_v20, %v990_v45  ;;  %v992_v51 = vpop.f32.mrb[2].mxu0 }
 0x189   : > { %v4857_v53 = vpack.c.bf16 %v1187_v47, %v1180_v46  ;;  %v1188_v54 = vsel %vm4808_vm7, %v4831_v44, 0.0  ;;  %v4188_v55 = vpack.c.bf16 %v4831_v44, %v4791_v34  ;;  %v994_v56 = vpop.f32.mrb[3].mxu0  ;;  %v4875_v59 = vadd.f32 %v4775_v27, %v992_v51  ;;  %vm4184_vm7 = vmpackc.low %vm4823_vm2, %vm4823_vm2 }
 0x18a   : > { %v4872_v58 = vpack.c.bf16 %v1188_v54, %v1181_v52  ;;  %v4878_v60 = vadd.f32 %v4775_v27, %v994_v56  ;;  %v1178_v62 = vsel %vm4823_vm2, %v4828_v43, 0.0  ;;  %v1179_v1 = vsel %vm4847_vm12, %v4852_v50, 0.0 }
 0x18b   : > { %1243 = vrot.lane.b32.xlu0 %v4857_v53, %s4531_s11  ;;  %v1117_v3 = vpop.f32.mrb[12].mxu1  ;;  %v1185_v9 = vsel %vm4823_vm2, %v4875_v59, 0.0  ;;  %v4185_v11 = vpack.c.bf16 %v4875_v59, %v4828_v43  ;;  %vm4190_vm2 = vmpackc.low %vm4747_vm14, %vm4747_vm14 }
 0x18c   : > { %v1186_v13 = vsel %vm4847_vm12, %v4878_v60, 0.0  ;;  %v4182_v15 = vpack.c.bf16 %v4878_v60, %v4852_v50  ;;  %v4269_v17 = vpop.f32.mrb[13].mxu1  ;;  %v1192_v19 = vpack.c.bf16 %v1185_v9, %v1178_v62  ;;  %v1130_v25 = vadd.f32 %v1117_v3, %v4732_v8  ;;  %vm4193_vm12 = vmpackc.low %vm4958_vm4, %vm4958_vm4 }
 0x18d   : > { %v1193_v23 = vpack.c.bf16 %v1186_v13, %v1179_v1  ;;  %v1120_v26 = vpop.f32.mrb[14].mxu1  ;;  %vm5683_vm14 = vmmov %vm5678_vm3 }
 0x18e   : > { %v1137_v31 = vadd.f32 %v1120_v26, %v4742_v14  ;;  %v1074_v32 = vpop.f32.mrb[4].mxu0  ;;  %v4270_v35 = vpop.f32.mrb[15].mxu1  ;;  %v4940_v36 = vadd.f32 %v4756_v20, %v1130_v25  ;;  %1239 = vrot.lane.b32.xlu1 %v1192_v19, %s4531_s11 }
 0x18f   : > { %v4944_v14 = vadd.f32 %v4756_v20, %v1074_v32  ;;  %1245 = vrot.lane.b32.xlu0 %v4872_v58, %s4531_s11  ;;  %v1076_v39 = vpop.f32.mrb[5].mxu0 }
 0x190   : > { %v4949_v40 = vadd.f32 %v4775_v27, %v1137_v31  ;;  %v4956_v46 = vadd.f32 %v4756_v20, %v1076_v39  ;;  %v1078_v47 = vpop.f32.mrb[6].mxu0  ;;  %v1184_v56 = vsel %vm4935_vm1, %v4940_v36, 0.0  ;;  %v4510_v39 = vld [vmem:[%s5638_s4 + $0x8] sm:$0xff]  }
 0x191   : > { %v4963_v52 = vadd.f32 %v4775_v27, %v1078_v47  ;;  %v1080_v54 = vpop.f32.mrb[7].mxu0  ;;  %v1182_v1 = vsel %vm4951_vm15, %v4944_v14, 0.0 }
 0x192   : > { %v1191_v57 = vsel %vm4935_vm1, %v4949_v40, 0.0  ;;  %v4200_v20 = vpack.c.bf16 %v4949_v40, %v4940_v36  ;;  %v4974_v61 = vadd.f32 %v4775_v27, %v1080_v54  ;;  %1241 = vrot.lane.b32.xlu1 %v1193_v23, %s4531_s11  ;;  %v1183_v9 = vsel %vm4958_vm4, %v4956_v46, 0.0  ;;  %v4512_v36 = vld [vmem:[%s5638_s4 + $0x10] sm:$0xff]  }
 0x193   : > { %v1198_v62 = vpack.c.bf16 %v1191_v57, %v1184_v56  ;;  %v1189_v3 = vsel %vm4951_vm15, %v4963_v52, 0.0  ;;  %v4197_v6 = vpack.c.bf16 %v4963_v52, %v4944_v14  ;;  %vm5685_vm15 = vmmov %vm5682_vm6 }
 0x194   : > { %v1196_v27 = vpack.c.bf16 %v1189_v3, %v1182_v1  ;;  %v1190_v13 = vsel %vm4958_vm4, %v4974_v61, 0.0  ;;  %v4194_v17 = vpack.c.bf16 %v4974_v61, %v4956_v46  ;;  %vm5684_vm4 = vcmask 1031168  }
 0x195   : > { %v1197_v25 = vpack.c.bf16 %v1190_v13, %v1183_v9 }
 0x196   : > { %1247 = vrot.lane.b32.xlu1 %v1196_v27, %s4531_s11 }
 0x197   : > { %1249 = vrot.lane.b32.xlu0 %v1197_v25, %s4531_s11 }
 0x19a   : > { %1251 = vrot.lane.b32.xlu1 %v1198_v62, %s4531_s11 }
 0x19b   : > { %1253 = vrot.lane.b32.xlu0 %v4530_v0, %s4531_s11 }
 0x19e   : > { %1630 = vrot.lane.b32.xlu1 %v1193_v23, %s4532_s12 }
 0x19f   : > { %1632 = vrot.lane.b32.xlu0 %v4857_v53, %s4532_s12 }
 0x1a2   : > { %1628 = vrot.lane.b32.xlu1 %v1192_v19, %s4532_s12 }
 0x1a3   : > { %1634 = vrot.lane.b32.xlu0 %v4872_v58, %s4532_s12 }
 0x1a6   : > { %1636 = vrot.lane.b32.xlu1 %v1196_v27, %s4532_s12 }
 0x1a7   : > { %1638 = vrot.lane.b32.xlu0 %v1197_v25, %s4532_s12 }
 0x1aa   : > { %1640 = vrot.lane.b32.xlu1 %v1198_v62, %s4532_s12 }
 0x1ab   : > { %1642 = vrot.lane.b32.xlu0 %v4530_v0, %s4532_s12 }
 0x1ae   : > { %1855 = vrot.lane.b32.xlu1 %v1193_v23, %s4535_s23 }
 0x1af   : > { %1857 = vrot.lane.b32.xlu0 %v4857_v53, %s4535_s23 }
 0x1b2   : > { %1853 = vrot.lane.b32.xlu1 %v1192_v19, %s4535_s23 }
 0x1b3   : > { %1859 = vrot.lane.b32.xlu0 %v4872_v58, %s4535_s23 }
 0x1b6   : > { %1861 = vrot.lane.b32.xlu1 %v1196_v27, %s4535_s23 }
 0x1b7   : > { %1863 = vrot.lane.b32.xlu0 %v1197_v25, %s4535_s23 }
 0x1ba   : > { %1865 = vrot.lane.b32.xlu1 %v1198_v62, %s4535_s23 }
 0x1bb   : > { %1867 = vrot.lane.b32.xlu0 %v4530_v0, %s4535_s23 }
 0x1be   : > { %2081 = vrot.lane.b32.xlu1 %v1193_v23, %s4536_s24  ;;  %v2297_v23 = vld [vmem:[%s5639_s5] sm:$0xff] }
 0x1bf   : > { %2083 = vrot.lane.b32.xlu0 %v4857_v53, %s4536_s24  ;;  %v2298_v53 = vld [vmem:[%s5639_s5 + $0x8] sm:$0xff] }
 0x1c2   : > { %2079 = vrot.lane.b32.xlu1 %v1192_v19, %s4536_s24 }
 0x1c3   : > { %2085 = vrot.lane.b32.xlu0 %v4872_v58, %s4536_s24 }
 0x1c6   : > { %2087 = vrot.lane.b32.xlu1 %v1196_v27, %s4536_s24 }
 0x1c7   : > { %2089 = vrot.lane.b32.xlu0 %v1197_v25, %s4536_s24 }
 0x1ca   : > { %2091 = vrot.lane.b32.xlu1 %v1198_v62, %s4536_s24 }
 0x1cb   : > { %2093 = vrot.lane.b32.xlu0 %v4530_v0, %s4536_s24 }
 0x1ce   : > { %2301 = vperm.xlu1 %4506, %v2297_v23  }
 0x1cf   : > { %2306 = vperm.xlu0 %4505, %v2298_v53  }
 0x1fd   : > { %v1244_v58 = vpop.permute.xlu0 %1243 }
 0x200   : > { %v1240_v19 = vpop.permute.xlu1 %1239 }
 0x201   : > { %v1246_v26 = vpop.permute.xlu0 %1245 }
 0x202   : > { %v1257_v57 = vsel %vm5649_vm0, %v1244_v58, %v1246_v26 }
 0x204   : > { %v1242_v31 = vpop.permute.xlu1 %1241 }
 0x205   : > { %v1255_v32 = vsel %vm5649_vm0, %v1240_v19, %v1242_v31  ;;  %v1256_v35 = vsel %vm5649_vm0, %v1242_v31, %v1244_v58  ;;  %v4513_v19 = vld [vmem:[%s5638_s4 + $0x18] sm:$0xff]  }
 0x206   : > { %1272 = vmatprep.subr.bf16.mxu0 %v1256_v35 }
 0x207   : > { %1273 = vmatpush1.bf16.msra.mxu0 %v1255_v32 }
 0x208   : > { %v1248_v47 = vpop.permute.xlu1 %1247 }
 0x209   : > { %v1250_v54 = vpop.permute.xlu0 %1249  ;;  %v1258_v56 = vsel %vm5649_vm0, %v1246_v26, %v1248_v47 }
 0x20a   : > { %4101 = vmatmul.mubr.msk.bf16.vlgmr.msra.gmra.mrb[8].mxu0 %vm5678_vm3, %v4510_v39  ;;  %1315 = vmatprep.subr.bf16.mxu1 %v1258_v56  ;;  %v1259_v27 = vsel %vm5649_vm0, %v1248_v47, %v1250_v54  ;;  %vm4199_vm3 = vmpackc.low %vm4935_vm1, %vm4935_vm1 }
 0x20b   : > { %1316 = vmatpush1.bf16.msra.mxu1 %v1257_v57  ;;  %1390 = vmatprep.mubr.bf16.mxu0 %v4530_v0  ;;  %vm5689_vm1 = vmmov %vm5684_vm4 }
 0x20c   : > { %v1252_v62 = vpop.permute.xlu1 %1251  ;;  %4271 = vmatprep.subr.bf16.mxu1 %v4533_v28 }
 0x20d   : > { %v1254_v1 = vpop.permute.xlu0 %1253  ;;  %v1260_v9 = vsel %vm5649_vm0, %v1250_v54, %v1252_v62 }
 0x20e   : > { %v1261_v3 = vsel %vm5649_vm0, %v1252_v62, %v1254_v1  ;;  %4102 = vmatmul.mubr.msk.bf16.vlgmr.msra.gmra.mrb[16].mxu1 %vm5679_vm9, %v4510_v39  ;;  %1358 = vmatprep.subr.bf16.mxu0 %v1260_v9  ;;  %vm5688_vm9 = vmmov %vm5682_vm6 }
 0x20f   : > { %1359 = vmatpush1.bf16.msra.mxu0 %v1259_v27  ;;  %4272 = vmatpush3.bf16.msra.mxu1 %v1261_v3  ;;  %v4514_v3 = vld [vmem:[%s5638_s4 + $0x20] sm:$0xff]  }
 0x210   : > { %v1631_v13 = vpop.permute.xlu1 %1630  ;;  %4183 = vmatprep.subr.msk.bf16.mxu0 %vm4181_vm5, %v4182_v15  ;;  %4189 = vmatprep.subr.msk.bf16.mxu1 %vm4187_vm8, %v4188_v55  ;;  %vm5686_vm5 = vmmov %vm5684_vm4 }
 0x211   : > { %v1633_v49 = vpop.permute.xlu0 %1632  ;;  %4273 = vmatprep.mubr.msk.bf16.mxu1 %vm5680_vm10, %v4533_v28  ;;  %vm5687_vm8 = vmmov %vm5684_vm4 }
 0x212   : > { %4103 = vmatmul.mubr.msk.bf16.vlgmr.msra.gmra.mrb[12].mxu0 %vm5681_vm11, %v4510_v39  ;;  %v1645_v18 = vsel %vm5684_vm4, %v1631_v13, %v1633_v49  ;;  %vm5648_vm11 = vcmask 1022976   ;;  %vm5695_vm4 = vmmov %vm5682_vm6 }
 0x213   : > { %4186 = vmatpush1.bf16.msk.msra.mxu0 %vm4184_vm7, %v4185_v11  ;;  %1482 = vmatprep.mubr.bf16.mxu0 %v4530_v0  ;;  %vm5690_vm7 = vmmov %vm5689_vm1 }
 0x214   : > { %v1629_v34 = vpop.permute.xlu1 %1628  ;;  %4195 = vmatprep.subr.msk.bf16.mxu0 %vm4193_vm12, %v4194_v17  ;;  %vm5691_vm12 = vmmov %vm5682_vm6 }
 0x215   : > { %v1635_v37 = vpop.permute.xlu0 %1634  ;;  %v1644_v59 = vsel %vm5687_vm8, %v1629_v34, %v1631_v13 }
 0x216   : > { %4274 = vmatmul.mubr.msk.bf16.vlgmr.msra.gmra.mrb[20].mxu1 %vm5682_vm6, %v4510_v39  ;;  %v1646_v8 = vsel %vm5690_vm7, %v1633_v49, %v1635_v37 }
 0x217   : > { %4192 = vmatpush1.bf16.msk.msra.mxu1 %vm4190_vm2, %v4191_v48  ;;  %1525 = vmatprep.mubr.bf16.mxu1 %v4530_v0  ;;  %vm5692_vm2 = vmmov %vm5689_vm1 }
 0x218   : > { %v1637_v43 = vpop.permute.xlu1 %1636  ;;  %4277 = vmatprep.subr.bf16.mxu1 %v4533_v28 }
 0x219   : > { %v1639_v44 = vpop.permute.xlu0 %1638  ;;  %v1647_v48 = vsel %vm5686_vm5, %v1635_v37, %v1637_v43 }
 0x21a   : > { %4106 = vmatmul.mubr.msk.bf16.vlgmr.msra.gmra.mrb[8].mxu0 %vm5683_vm14, %v4511_v42  ;;  %v1648_v40 = vsel %vm5692_vm2, %v1637_v43, %v1639_v44  ;;  %vm5694_vm14 = vmmov %vm5682_vm6 }
 0x21b   : > { %4198 = vmatpush1.bf16.msk.msra.mxu0 %vm4196_vm13, %v4197_v6  ;;  %1568 = vmatprep.mubr.bf16.mxu0 %v4530_v0  ;;  %vm5693_vm13 = vmmov %vm5689_vm1 }
 0x21c   : > { %1661 = vmatprep.subr.bf16.mxu0 %v1645_v18  ;;  %v1641_v30 = vpop.permute.xlu1 %1640 }
 0x21d   : > { %v1643_v38 = vpop.permute.xlu0 %1642  ;;  %v1649_v60 = vsel %vm5689_vm1, %v1639_v44, %v1641_v30 }
 0x21e   : > { %4107 = vmatmul.mubr.msk.bf16.vlgmr.msra.gmra.mrb[16].mxu1 %vm5685_vm15, %v4511_v42  ;;  %v1650_v52 = vsel %vm5693_vm13, %v1641_v30, %v1643_v38  ;;  %vm5647_vm15 = vcmask 1014784   ;;  %vm398_vm13 = vcmp.ge.s32.totalorder %v4728_v5, 1 }
 0x21f   : > { %4278 = vmatpush3.bf16.msk.msra.mxu1 %vm4199_vm3, %v4200_v20  ;;  %4279 = vmatprep.mubr.msk.bf16.mxu1 %vm5680_vm10, %v4533_v28  ;;  %vm5696_vm3 = vmmov %vm5695_vm4 }
 0x220   : > { %1704 = vmatprep.subr.bf16.mxu1 %v1647_v48  ;;  %v1856_v50 = vpop.permute.xlu1 %1855  ;;  %vm5697_vm5 = vmmov %vm5696_vm3 }
 0x221   : > { %v1858_v55 = vpop.permute.xlu0 %1857  ;;  %vm5698_vm8 = vmmov %vm5696_vm3 }
 0x222   : > { %4108 = vmatmul.mubr.msk.bf16.vlgmr.msra.gmra.mrb[12].mxu0 %vm5688_vm9, %v4511_v42  ;;  %v1871_v46 = vsel %vm5648_vm11, %v1856_v50, %v1858_v55  ;;  %vm5699_vm9 = vmmov %vm5696_vm3 }
 0x223   : > { %1662 = vmatpush1.bf16.msra.mxu0 %v1644_v59  ;;  %1693 = vmatprep.mubr.bf16.mxu0 %v4530_v0  ;;  %vm5700_vm1 = vmmov %vm5696_vm3 }
 0x224   : > { %1747 = vmatprep.subr.bf16.mxu0 %v1649_v60  ;;  %v1854_v11 = vpop.permute.xlu1 %1853  ;;  %vm5701_vm7 = vmmov %vm5700_vm1 }
 0x225   : > { %v1860_v15 = vpop.permute.xlu0 %1859  ;;  %v1870_v17 = vsel %vm5648_vm11, %v1854_v11, %v1856_v50  ;;  %vm5703_vm2 = vmmov %vm5700_vm1 }
 0x226   : > { %4280 = vmatmul.mubr.msk.bf16.vlgmr.msra.gmra.mrb[24].mxu1 %vm5691_vm12, %v4511_v42  ;;  %v1872_v53 = vsel %vm5648_vm11, %v1858_v55, %v1860_v15  ;;  %vm5702_vm12 = vmmov %vm5700_vm1 }
 0x227   : > { %1705 = vmatpush1.bf16.msra.mxu1 %v1646_v8  ;;  %1736 = vmatprep.mubr.bf16.mxu1 %v4530_v0 }
 0x228   : > { %v1862_v14 = vpop.permute.xlu1 %1861  ;;  %4283 = vmatprep.subr.bf16.mxu1 %v4533_v28 }
 0x229   : > { %v1864_v45 = vpop.permute.xlu0 %1863  ;;  %v1873_v20 = vsel %vm5648_vm11, %v1860_v15, %v1862_v14 }
 0x22a   : > { %4113 = vmatmul.mubr.msk.bf16.vlgmr.msra.gmra.mrb[8].mxu0 %vm5682_vm6, %v4512_v36  ;;  %v1874_v26 = vsel %vm5648_vm11, %v1862_v14, %v1864_v45  ;;  %vm5704_vm6 = vmmov %vm5700_vm1 }
 0x22b   : > { %1748 = vmatpush1.bf16.msra.mxu0 %v1648_v40  ;;  %1779 = vmatprep.mubr.bf16.mxu0 %v4530_v0 }
 0x22c   : > { %1887 = vmatprep.subr.bf16.mxu0 %v1871_v46  ;;  %v1866_v51 = vpop.permute.xlu1 %1865 }
 0x22d   : > { %v1868_v61 = vpop.permute.xlu0 %1867  ;;  %v1875_v25 = vsel %vm5648_vm11, %v1864_v45, %v1866_v51 }
 0x22e   : > { %4114 = vmatmul.mubr.msk.bf16.vlgmr.msra.gmra.mrb[16].mxu1 %vm5694_vm14, %v4512_v36  ;;  %v1876_v39 = vsel %vm5648_vm11, %v1866_v51, %v1868_v61  ;;  %vm405_vm14 = vcmp.lt.s32.totalorder %v4728_v5, 13  ;;  %v2323_v61 = vld [vmem:[%s5180_s26] sm:$0xff] }
 0x22f   : > { %4284 = vmatpush3.bf16.msra.mxu1 %v1650_v52  ;;  %4285 = vmatprep.mubr.msk.bf16.mxu1 %vm5680_vm10, %v4533_v28 }
 0x230   : > { %1930 = vmatprep.subr.bf16.mxu1 %v1873_v20  ;;  %v2082_v6 = vpop.permute.xlu1 %2081 }
 0x231   : > { %v2084_v58 = vpop.permute.xlu0 %2083 }
 0x232   : > { %4115 = vmatmul.mubr.msk.bf16.vlgmr.msra.gmra.mrb[12].mxu0 %vm5695_vm4, %v4512_v36  ;;  %v2097_v32 = vsel %vm5647_vm15, %v2082_v6, %v2084_v58  ;;  %vm399_vm4 = vcmp.ge.s32.totalorder %v4730_v7, 1 }
 0x233   : > { %1888 = vmatpush1.bf16.msra.mxu0 %v1870_v17  ;;  %1919 = vmatprep.mubr.bf16.mxu0 %v4530_v0  ;;  %v2324_v17 = vld [vmem:[%s5180_s26 + $0x8] sm:$0xff] }
 0x234   : > { %1973 = vmatprep.subr.bf16.mxu0 %v1875_v25  ;;  %v2080_v23 = vpop.permute.xlu1 %2079 }
 0x235   : > { %v2086_v35 = vpop.permute.xlu0 %2085  ;;  %v2096_v56 = vsel %vm5647_vm15, %v2080_v23, %v2082_v6 }
 0x236   : > { %4286 = vmatmul.mubr.msk.bf16.vlgmr.msra.gmra.mrb[28].mxu1 %vm5696_vm3, %v4512_v36  ;;  %v2098_v1 = vsel %vm5647_vm15, %v2084_v58, %v2086_v35  ;;  %vm406_vm3 = vcmp.lt.s32.totalorder %v4730_v7, 13  ;;  %v2330_v58 = vld [vmem:[%s5180_s26 + $0x38] sm:$0xff] }
 0x237   : > { %1931 = vmatpush1.bf16.msra.mxu1 %v1872_v53  ;;  %1962 = vmatprep.mubr.bf16.mxu1 %v4530_v0 }
 0x238   : > { %4289 = vmatprep.subr.bf16.mxu1 %v4533_v28  ;;  %v2088_v31 = vpop.permute.xlu1 %2087 }
 0x239   : > { %v2099_v47 = vsel %vm5647_vm15, %v2086_v35, %v2088_v31  ;;  %v2090_v57 = vpop.permute.xlu0 %2089  ;;  %v2331_v35 = vld [vmem:[%s5180_s26 + $0x40] sm:$0xff] }
 0x23a   : > { %4120 = vmatmul.mubr.msk.bf16.vlgmr.msra.gmra.mrb[8].mxu0 %vm5697_vm5, %v4513_v19  ;;  %v2100_v9 = vsel %vm5647_vm15, %v2088_v31, %v2090_v57  ;;  %vm5190_vm5 = vmand %vm398_vm13, %vm405_vm14  ;;  %vm408_vm13 = vcmp.lt.s32.totalorder %v4725_v4, 13  ;;  %vm422_vm14 = vcmp.lt.s32.totalorder %v4735_v10, 30 }
 0x23b   : > { %1974 = vmatpush1.bf16.msra.mxu0 %v1874_v26  ;;  %2005 = vmatprep.mubr.bf16.mxu0 %v4530_v0 }
 0x23c   : > { %2113 = vmatprep.subr.bf16.mxu0 %v2097_v32  ;;  %v2092_v54 = vpop.permute.xlu1 %2091 }
 0x23d   : > { %v2101_v62 = vsel %vm5647_vm15, %v2090_v57, %v2092_v54  ;;  %v2094_v27 = vpop.permute.xlu0 %2093 }
 0x23e   : > { %4121 = vmatmul.mubr.msk.bf16.vlgmr.msra.gmra.mrb[16].mxu1 %vm5698_vm8, %v4513_v19  ;;  %v2102_v13 = vsel %vm5647_vm15, %v2092_v54, %v2094_v27  ;;  %vm419_vm8 = vcmp.lt.s32.totalorder %v4739_v12, 30  ;;  %vm409_vm15 = vcmp.lt.s32.totalorder %v4768_v24, 13 }
 0x23f   : > { %4290 = vmatpush3.bf16.msra.mxu1 %v1876_v39  ;;  %4291 = vmatprep.mubr.msk.bf16.mxu1 %vm5680_vm10, %v4533_v28 }
 0x240   : > { %2156 = vmatprep.subr.bf16.mxu1 %v2099_v47 }
 0x242   : > { %4122 = vmatmul.mubr.msk.bf16.vlgmr.msra.gmra.mrb[12].mxu0 %vm5699_vm9, %v4513_v19  ;;  %vm420_vm9 = vcmp.lt.s32.totalorder %v4745_v16, 30 }
 0x243   : > { %2114 = vmatpush1.bf16.msra.mxu0 %v2096_v56  ;;  %2145 = vmatprep.mubr.bf16.mxu0 %v4530_v0  ;;  %v2325_v56 = vld [vmem:[%s5180_s26 + $0x10] sm:$0xff] }
 0x244   : > { %2199 = vmatprep.subr.bf16.mxu0 %v2101_v62 }
 0x246   : > { %4292 = vmatmul.mubr.msk.bf16.vlgmr.msra.gmra.mrb[32].mxu1 %vm5700_vm1, %v4513_v19  ;;  %vm5198_vm1 = vmand %vm399_vm4, %vm406_vm3  ;;  %vm402_vm3 = vcmp.ge.s32.totalorder %v4768_v24, 1 }
 0x247   : > { %2157 = vmatpush1.bf16.msra.mxu1 %v2098_v1  ;;  %2188 = vmatprep.mubr.bf16.mxu1 %v4530_v0  ;;  %vm5217_vm4 = vmand %vm5190_vm5, %vm419_vm8  ;;  %vm423_vm5 = vcmp.lt.s32.totalorder %v4788_v33, 30  ;;  %vm403_vm8 = vcmp.ge.s32.totalorder %v4777_v29, 1 }
 0x248   : > { %4295 = vmatprep.subr.bf16.mxu1 %v4533_v28  ;;  %vm5229_vm11 = vmand %vm5198_vm1, %vm420_vm9  ;;  %vm410_vm1 = vcmp.lt.s32.totalorder %v4777_v29, 13 }
 0x24a   : > { %4127 = vmatmul.mubr.msk.bf16.vlgmr.msra.gmra.mrb[8].mxu0 %vm5701_vm7, %v4514_v3  ;;  %vm400_vm7 = vcmp.ge.s32.totalorder %v4719_v63, 1 }
 0x24b   : > { %2200 = vmatpush1.bf16.msra.mxu0 %v2100_v9  ;;  %2231 = vmatprep.mubr.bf16.mxu0 %v4530_v0  ;;  %v2326_v9 = vld [vmem:[%s5180_s26 + $0x18] sm:$0xff] }
 0x24d   : > { %v5188_v51 = vpop.permute.xlu1 %2301 }
 0x24e   : > { %4128 = vmatmul.mubr.msk.bf16.vlgmr.msra.gmra.mrb[16].mxu1 %vm5702_vm12, %v4514_v3  ;;  %vm407_vm12 = vcmp.lt.s32.totalorder %v4719_v63, 13  ;;  %v5206_v25 = vpop.permute.xlu0 %2306 }
 0x24f   : > { %4296 = vmatpush3.bf16.msra.mxu1 %v2102_v13  ;;  %4297 = vmatprep.mubr.msk.bf16.mxu1 %vm5680_vm10, %v4533_v28  ;;  %vm5241_vm9 = vmand %vm400_vm7, %vm407_vm12  ;;  %vm424_vm7 = vcmp.lt.s32.totalorder %v4817_v41, 30 }
 0x252   : > { %4129 = vmatmul.mubr.msk.bf16.vlgmr.msra.gmra.mrb[12].mxu0 %vm5703_vm2, %v4514_v3  ;;  %vm421_vm2 = vcmp.lt.s32.totalorder %v4721_v2, 30  ;;  %v4516_v2 = vld [vmem:[%s5640_s6] sm:$0xff]  }
 0x253   : > { %2505 = vmatprep.mubr.bf16.mxu0 %v4530_v0  ;;  %vm5268_vm12 = vmand %vm5241_vm9, %vm421_vm2 }
 0x256   : > { %4298 = vmatmul.mubr.msk.bf16.vlgmr.msra.gmra.mrb[36].mxu1 %vm5704_vm6, %v4514_v3  ;;  %vm401_vm6 = vcmp.ge.s32.totalorder %v4725_v4, 1 }
 0x257   : > { %2548 = vmatprep.mubr.bf16.mxu1 %v4530_v0  ;;  %vm5252_vm0 = vmand %vm401_vm6, %vm408_vm13  ;;  %vm404_vm6 = vcmp.ge.s32.totalorder %v4759_v21, 1 }
 0x258   : > { %vm5282_vm2 = vmand %vm5252_vm0, %vm422_vm14 }
 0x259   : > { %vm5302_vm0 = vmand %vm402_vm3, %vm409_vm15  ;;  %vm411_vm3 = vcmp.lt.s32.totalorder %v4759_v21, 13 }
 0x25a   : > { %vm5315_vm13 = vmand %vm403_vm8, %vm410_vm1  ;;  %vm425_vm8 = vcmp.lt.s32.totalorder %v4761_v22, 30  ;;  %vm5731_vm1 = vcmask 1039360  }
 0x25b   : > { %vm5335_vm15 = vmand %vm5302_vm0, %vm423_vm5 }
 0x25c   : > { %vm5347_vm14 = vmand %vm5315_vm13, %vm424_vm7 }
 0x25d   : > { %vm418_vm5 = vmand %vm404_vm6, %vm411_vm3  ;;  %vm5736_vm3 = vcmask 130048  }
 0x25e   : > { %vm5380_vm9 = vmand %vm418_vm5, %vm425_vm8 }
 0x25f   : > { %vm5732_vm7 = vmmov %vm5731_vm1 }
 0x260   : > { %vm5733_vm6 = vmmov %vm5731_vm1 }
 0x261   : > { %vm5734_vm0 = vmmov %vm5731_vm1 }
 0x262   : > { %vm5735_vm13 = vmmov %vm5734_vm0 }
 0x263   : > { %vm5737_vm5 = vmmov %vm5734_vm0 }
 0x264   : > { %vm4202_vm8 = vmpackc.low %vm5229_vm11, %vm5229_vm11 }
 0x2e9   : > { %v1435_v49 = vpop.f32.mrb[20].mxu1 }
 0x2ea   : > { %v4275_v34 = vpop.f32.mrb[21].mxu1 }
 0x2eb   : > { %v1438_v37 = vpop.f32.mrb[22].mxu1 }
 0x2ec   : > { %v4276_v42 = vpop.f32.mrb[23].mxu1 }
 0x2f9   : > { %v1613_v43 = vpop.f32.mrb[24].mxu1 }
 0x2fa   : > { %v1614_v44 = vadd.f32 %v1613_v43, %v1435_v49  ;;  %v4281_v18 = vpop.f32.mrb[25].mxu1 }
 0x2fb   : > { %v1616_v30 = vpop.f32.mrb[26].mxu1 }
 0x2fc   : > { %v1617_v38 = vadd.f32 %v1616_v30, %v1438_v37  ;;  %v4282_v48 = vpop.f32.mrb[27].mxu1  ;;  %v2332_v37 = vld [vmem:[%s5180_s26 + $0x48] sm:$0xff] }
 0x309   : > { %v1824_v50 = vpop.f32.mrb[28].mxu1 }
 0x30a   : > { %v1837_v55 = vadd.f32 %v1824_v50, %v1614_v44  ;;  %v4287_v59 = vpop.f32.mrb[29].mxu1 }
 0x30b   : > { %v1827_v60 = vpop.f32.mrb[30].mxu1  ;;  %v2333_v59 = vld [vmem:[%s5180_s26 + $0x50] sm:$0xff] }
 0x30c   : > { %v1844_v11 = vadd.f32 %v1827_v60, %v1617_v38  ;;  %v4288_v15 = vpop.f32.mrb[31].mxu1 }
 0x319   : > { %v2050_v8 = vpop.f32.mrb[32].mxu1 }
 0x31a   : > { %v5173_v36 = vadd.f32 %v2050_v8, %v1837_v55  ;;  %v4293_v14 = vpop.f32.mrb[33].mxu1 }
 0x31b   : > { %v2053_v40 = vpop.f32.mrb[34].mxu1 }
 0x31c   : > { %v5186_v45 = vadd.f32 %v2053_v40, %v1844_v11  ;;  %v4294_v46 = vpop.f32.mrb[35].mxu1 }
 0x31d   : > { %v2147_v20 = vpop.f32.mrb[8].mxu0 }
 0x31e   : > { %v2309_v5 = vadd.f32 %v5188_v51, %v2147_v20  ;;  %v2149_v6 = vpop.f32.mrb[9].mxu0 }
 0x31f   : > { %v2310_v23 = vadd.f32 %v5188_v51, %v2149_v6  ;;  %v2151_v53 = vpop.f32.mrb[10].mxu0 }
 0x320   : > { %v2337_v26 = vadd.f32 %v2323_v61, %v2309_v5  ;;  %v2316_v31 = vadd.f32 %v5206_v25, %v2151_v53  ;;  %v2153_v32 = vpop.f32.mrb[11].mxu0  ;;  %v2327_v61 = vld [vmem:[%s5180_s26 + $0x20] sm:$0xff] }
 0x321   : > { %v2338_v39 = vadd.f32 %v2324_v17, %v2310_v23  ;;  %v2317_v47 = vadd.f32 %v5206_v25, %v2153_v32  ;;  %v2190_v54 = vpop.f32.mrb[16].mxu1 }
 0x322   : > { %v2351_v57 = vmax.f32 %v2337_v26, 0.0  ;;  %v2344_v62 = vadd.f32 %v2330_v58, %v2316_v31  ;;  %v2311_v1 = vadd.f32 %v5188_v51, %v2190_v54  ;;  %v2192_v3 = vpop.f32.mrb[17].mxu1  ;;  %v2328_v58 = vld [vmem:[%s5180_s26 + $0x28] sm:$0xff]  ;;  %v2334_v26 = vld [vmem:[%s5180_s26 + $0x58] sm:$0xff]  ;;  %v2335_v54 = vld [vmem:[%s5180_s26 + $0x60] sm:$0xff] }
 0x323   : > { %v2352_v27 = vmax.f32 %v2338_v39, 0.0  ;;  %v2345_v13 = vadd.f32 %v2331_v35, %v2317_v47  ;;  %v2312_v63 = vadd.f32 %v5188_v51, %v2192_v3  ;;  %v2194_v34 = vpop.f32.mrb[18].mxu1 }
 0x324   : > { %v2379_v42 = vsel %vm5217_vm4, %v2351_v57, 0.0  ;;  %v2358_v43 = vmax.f32 %v2344_v62, 0.0  ;;  %v2339_v44 = vadd.f32 %v2325_v56, %v2311_v1  ;;  %v2318_v18 = vadd.f32 %v5206_v25, %v2194_v34  ;;  %v2196_v30 = vpop.f32.mrb[19].mxu1 }
 0x325   : > { %v2380_v4 = vsel %vm5229_vm11, %v2352_v27, 0.0  ;;  %v2359_v38 = vmax.f32 %v2345_v13, 0.0  ;;  %v2340_v50 = vadd.f32 %v2326_v9, %v2312_v63  ;;  %v2319_v55 = vadd.f32 %v5206_v25, %v2196_v30  ;;  %v2233_v60 = vpop.f32.mrb[12].mxu0 }
 0x326   : > { %v2386_v11 = vsel %vm5217_vm4, %v2358_v43, 0.0  ;;  %v5276_v15 = vpack.c.bf16 %v2358_v43, %v2351_v57  ;;  %v2353_v8 = vmax.f32 %v2339_v44, 0.0  ;;  %v2346_v14 = vadd.f32 %v2332_v37, %v2318_v18  ;;  %v2235_v40 = vpop.f32.mrb[13].mxu0 }
 0x327   : > { %v5287_v46 = vpack.c.bf16 %v2386_v11, %v2379_v42  ;;  %v2387_v52 = vsel %vm5229_vm11, %v2359_v38, 0.0  ;;  %v5291_v20 = vpack.c.bf16 %v2359_v38, %v2352_v27  ;;  %v2354_v10 = vmax.f32 %v2340_v50, 0.0  ;;  %v2237_v5 = vpop.f32.mrb[14].mxu0  ;;  %v2329_v50 = vld [vmem:[%s5180_s26 + $0x30] sm:$0xff]  ;;  %vm4211_vm11 = vmpackc.low %vm5268_vm12, %vm5268_vm12 }
 0x328   : > { %v5294_v7 = vpack.c.bf16 %v2387_v52, %v2380_v4  ;;  %v2381_v6 = vsel %vm5268_vm12, %v2353_v8, 0.0  ;;  %v2360_v17 = vmax.f32 %v2346_v14, 0.0  ;;  %v2347_v23 = vadd.f32 %v2333_v59, %v2319_v55  ;;  %v2239_v31 = vpop.f32.mrb[15].mxu0  ;;  %v2336_v52 = vld [vmem:[%s5180_s26 + $0x68] sm:$0xff] }
 0x329   : > { %v2382_v32 = vsel %vm5282_vm2, %v2354_v10, 0.0  ;;  %v2313_v35 = vadd.f32 %v5188_v51, %v2233_v60  ;;  %v2314_v24 = vadd.f32 %v5188_v51, %v2235_v40  ;;  %v2320_v47 = vadd.f32 %v5206_v25, %v2237_v5  ;;  %v2276_v56 = vpop.f32.mrb[36].mxu1 }
 0x32a   : > { %v2388_v57 = vsel %vm5268_vm12, %v2360_v17, 0.0  ;;  %v5324_v62 = vpack.c.bf16 %v2360_v17, %v2353_v8  ;;  %v2361_v16 = vmax.f32 %v2347_v23, 0.0  ;;  %v2321_v1 = vadd.f32 %v5206_v25, %v2239_v31  ;;  %v4299_v3 = vpop.f32.mrb[37].mxu1  ;;  %2442 = vrot.lane.b32.xlu1 %v5294_v7, %s4531_s11  ;;  %vm4217_vm12 = vmpackc.low %vm5335_vm15, %vm5335_vm15 }
 0x32b   : > { %v5329_v29 = vpack.c.bf16 %v2388_v57, %v2381_v6  ;;  %v2341_v27 = vadd.f32 %v2327_v61, %v2313_v35  ;;  %v2342_v13 = vadd.f32 %v2328_v58, %v2314_v24  ;;  %v2348_v49 = vadd.f32 %v2334_v26, %v2320_v47  ;;  %v2279_v63 = vpop.f32.mrb[38].mxu1  ;;  %v3948_v58 = vld [vmem:[%s5641_s7] sm:$0xff]  ;;  %v3949_v26 = vld [vmem:[%s5641_s7 + $0x8] sm:$0xff] }
 0x32c   : > { %v2389_v34 = vsel %vm5282_vm2, %v2361_v16, 0.0  ;;  %v5341_v37 = vpack.c.bf16 %v2361_v16, %v2354_v10  ;;  %v2349_v42 = vadd.f32 %v2335_v54, %v2321_v1  ;;  %v2289_v43 = vadd.f32 %v2276_v56, %v5173_v36  ;;  %v4300_v44 = vpop.f32.mrb[39].mxu1  ;;  %v4515_v54 = vld [vmem:[%s5640_s6 + $0x8] sm:$0xff]  }
 0x32d   : > { %v5352_v18 = vpack.c.bf16 %v2389_v34, %v2382_v32  ;;  %v2355_v30 = vmax.f32 %v2341_v27, 0.0  ;;  %v2356_v4 = vmax.f32 %v2342_v13, 0.0  ;;  %v2362_v38 = vmax.f32 %v2348_v49, 0.0 }
 0x32e   : > { %v2363_v55 = vmax.f32 %v2349_v42, 0.0  ;;  %v2315_v41 = vadd.f32 %v5188_v51, %v2289_v43  ;;  %v2296_v59 = vadd.f32 %v2279_v63, %v5186_v45 }
 0x32f   : > { %v2383_v60 = vsel %vm5335_vm15, %v2355_v30, 0.0  ;;  %v2384_v36 = vsel %vm5347_vm14, %v2356_v4, 0.0  ;;  %v2390_v11 = vsel %vm5335_vm15, %v2362_v38, 0.0  ;;  %v5364_v8 = vpack.c.bf16 %v2362_v38, %v2355_v30  ;;  %2446 = vrot.lane.b32.xlu1 %v5352_v18, %s4531_s11 }
 0x330   : > { %v2397_v14 = vpack.c.bf16 %v2390_v11, %v2383_v60  ;;  %v2391_v51 = vsel %vm5347_vm14, %v2363_v55, 0.0  ;;  %v5370_v40 = vpack.c.bf16 %v2363_v55, %v2356_v4  ;;  %v2343_v45 = vadd.f32 %v2329_v50, %v2315_v41  ;;  %v4517_v4 = vld [vmem:[%s5640_s6 + $0x10] sm:$0xff]  }
 0x331   : > { %v2398_v10 = vpack.c.bf16 %v2391_v51, %v2384_v36  ;;  %v2322_v61 = vadd.f32 %v5206_v25, %v2296_v59 }
 0x332   : > { %2448 = vrot.lane.b32.xlu0 %v2397_v14, %s4531_s11  ;;  %v2357_v5 = vmax.f32 %v2343_v45, 0.0 }
 0x333   : > { %v2350_v6 = vadd.f32 %v2336_v52, %v2322_v61  ;;  %2440 = vrot.lane.b32.xlu1 %v5287_v46, %s4531_s11  ;;  %v4518_v61 = vld [vmem:[%s5640_s6 + $0x18] sm:$0xff]  }
 0x334   : > { %v2385_v21 = vsel %vm5380_vm9, %v2357_v5, 0.0 }
 0x335   : > { %v2364_v23 = vmax.f32 %v2350_v6, 0.0 }
 0x336   : > { %2444 = vrot.lane.b32.xlu0 %v5329_v29, %s4531_s11 }
 0x337   : > { %v2392_v22 = vsel %vm5380_vm9, %v2364_v23, 0.0  ;;  %v5390_v25 = vpack.c.bf16 %v2364_v23, %v2357_v5 }
 0x338   : > { %v2399_v53 = vpack.c.bf16 %v2392_v22, %v2385_v21 }
 0x33a   : > { %2452 = vrot.lane.b32.xlu1 %v2399_v53, %s4531_s11  ;;  %2450 = vrot.lane.b32.xlu0 %v2398_v10, %s4531_s11 }
 0x33e   : > { %2835 = vrot.lane.b32.xlu1 %v5352_v18, %s4532_s12  ;;  %2454 = vrot.lane.b32.xlu0 %v4530_v0, %s4531_s11  ;;  %s4537_s11 = smov 123  }
 0x342   : > { %2831 = vrot.lane.b32.xlu1 %v5294_v7, %s4532_s12  ;;  %2837 = vrot.lane.b32.xlu0 %v2397_v14, %s4532_s12 }
 0x346   : > { %2829 = vrot.lane.b32.xlu1 %v5287_v46, %s4532_s12  ;;  %2833 = vrot.lane.b32.xlu0 %v5329_v29, %s4532_s12 }
 0x34a   : > { %2841 = vrot.lane.b32.xlu1 %v2399_v53, %s4532_s12  ;;  %2839 = vrot.lane.b32.xlu0 %v2398_v10, %s4532_s12 }
 0x34e   : > { %3060 = vrot.lane.b32.xlu1 %v5352_v18, %s4535_s23  ;;  %2843 = vrot.lane.b32.xlu0 %v4530_v0, %s4532_s12  ;;  %s4538_s12 = smov 122  }
 0x352   : > { %3056 = vrot.lane.b32.xlu1 %v5294_v7, %s4535_s23  ;;  %3062 = vrot.lane.b32.xlu0 %v2397_v14, %s4535_s23 }
 0x356   : > { %3054 = vrot.lane.b32.xlu1 %v5287_v46, %s4535_s23  ;;  %3058 = vrot.lane.b32.xlu0 %v5329_v29, %s4535_s23 }
 0x35a   : > { %3066 = vrot.lane.b32.xlu1 %v2399_v53, %s4535_s23  ;;  %3064 = vrot.lane.b32.xlu0 %v2398_v10, %s4535_s23 }
 0x35e   : > { %3285 = vrot.lane.b32.xlu1 %v5352_v18, %s4536_s24  ;;  %3068 = vrot.lane.b32.xlu0 %v4530_v0, %s4535_s23 }
 0x362   : > { %3281 = vrot.lane.b32.xlu1 %v5294_v7, %s4536_s24  ;;  %3287 = vrot.lane.b32.xlu0 %v2397_v14, %s4536_s24 }
 0x366   : > { %3279 = vrot.lane.b32.xlu1 %v5287_v46, %s4536_s24  ;;  %3283 = vrot.lane.b32.xlu0 %v5329_v29, %s4536_s24 }
 0x36a   : > { %3291 = vrot.lane.b32.xlu1 %v2399_v53, %s4536_s24  ;;  %3289 = vrot.lane.b32.xlu0 %v2398_v10, %s4536_s24 }
 0x36e   : > { %3510 = vrot.lane.b32.xlu1 %v5352_v18, %s4537_s11  ;;  %3293 = vrot.lane.b32.xlu0 %v4530_v0, %s4536_s24  ;;  %s5615_s24 = scalar_lea.vmem %s5642_s8, %s4487_s21 }
 0x372   : > { %3506 = vrot.lane.b32.xlu1 %v5294_v7, %s4537_s11  ;;  %3512 = vrot.lane.b32.xlu0 %v2397_v14, %s4537_s11 }
 0x376   : > { %3504 = vrot.lane.b32.xlu1 %v5287_v46, %s4537_s11  ;;  %3508 = vrot.lane.b32.xlu0 %v5329_v29, %s4537_s11 }
 0x37a   : > { %3516 = vrot.lane.b32.xlu1 %v2399_v53, %s4537_s11  ;;  %3514 = vrot.lane.b32.xlu0 %v2398_v10, %s4537_s11 }
 0x37e   : > { %3736 = vrot.lane.b32.xlu1 %v5352_v18, %s4538_s12  ;;  %3518 = vrot.lane.b32.xlu0 %v4530_v0, %s4537_s11 }
 0x382   : > { %3732 = vrot.lane.b32.xlu1 %v5294_v7, %s4538_s12  ;;  %3738 = vrot.lane.b32.xlu0 %v2397_v14, %s4538_s12 }
 0x386   : > { %3730 = vrot.lane.b32.xlu1 %v5287_v46, %s4538_s12  ;;  %3734 = vrot.lane.b32.xlu0 %v5329_v29, %s4538_s12 }
 0x38a   : > { %3742 = vrot.lane.b32.xlu1 %v2399_v53, %s4538_s12  ;;  %3740 = vrot.lane.b32.xlu0 %v2398_v10, %s4538_s12 }
 0x38e   : > { %3952 = vperm.xlu1 %4506, %v3948_v58   ;;  %3744 = vrot.lane.b32.xlu0 %v4530_v0, %s4538_s12 }
 0x392   : > { %3957 = vperm.xlu0 %4505, %v3949_v26  }
 0x39c   : > { %v2443_v7 = vpop.permute.xlu1 %2442 }
 0x3a1   : > { %v2447_v31 = vpop.permute.xlu1 %2446 }
 0x3a4   : > { %v2449_v32 = vpop.permute.xlu0 %2448 }
 0x3a5   : > { %v2459_v46 = vsel %vm5731_vm1, %v2447_v31, %v2449_v32  ;;  %v2441_v35 = vpop.permute.xlu1 %2440  ;;  %vm5738_vm1 = vmmov %vm5736_vm3 }
 0x3a6   : > { %2516 = vmatprep.subr.bf16.mxu1 %v2459_v46  ;;  %v2456_v56 = vsel %vm5734_vm0, %v2441_v35, %v2443_v7 }
 0x3a8   : > { %v2445_v39 = vpop.permute.xlu0 %2444 }
 0x3a9   : > { %v2458_v24 = vsel %vm5732_vm7, %v2445_v39, %v2447_v31  ;;  %v2457_v47 = vsel %vm5733_vm6, %v2443_v7, %v2445_v39  ;;  %vm4208_vm7 = vmpackc.low %vm5282_vm2, %vm5282_vm2  ;;  %v4519_v39 = vld [vmem:[%s5640_s6 + $0x20] sm:$0xff]  }
 0x3aa   : > { %2473 = vmatprep.subr.bf16.mxu0 %v2457_v47  ;;  %2517 = vmatpush1.bf16.msra.mxu1 %v2458_v24  ;;  %vm5739_vm6 = vmmov %vm5734_vm0 }
 0x3ab   : > { %2474 = vmatpush1.bf16.msra.mxu0 %v2456_v56  ;;  %4301 = vmatprep.subr.bf16.mxu1 %v4533_v28  ;;  %vm4205_vm0 = vmpackc.low %vm5217_vm4, %vm5217_vm4 }
 0x3ac   : > { %v2453_v57 = vpop.permute.xlu1 %2452  ;;  %v2451_v16 = vpop.permute.xlu0 %2450  ;;  %vm4214_vm2 = vmpackc.low %vm5347_vm14, %vm5347_vm14 }
 0x3ad   : > { %v2460_v1 = vsel %vm5735_vm13, %v2449_v32, %v2451_v16  ;;  %4135 = vmatmul.mubr.msk.bf16.vlgmr.msra.gmra.mrb[40].mxu1 %vm5736_vm3, %v4515_v54  ;;  %v2461_v3 = vsel %vm5737_vm5, %v2451_v16, %v2453_v57  ;;  %vm5740_vm13 = vmmov %vm5738_vm1 }
 0x3ae   : > { %4134 = vmatmul.mubr.msk.bf16.vlgmr.msra.gmra.mrb[16].mxu0 %vm5738_vm1, %v4515_v54  ;;  %2559 = vmatprep.subr.bf16.mxu0 %v2461_v3  ;;  %vm5741_vm3 = vmmov %vm5738_vm1 }
 0x3af   : > { %2560 = vmatpush1.bf16.msra.mxu0 %v2460_v1  ;;  %4303 = vmatprep.mubr.msk.bf16.mxu1 %vm5680_vm10, %v4533_v28  ;;  %vm4220_vm4 = vmpackc.low %vm5380_vm9, %vm5380_vm9 }
 0x3b0   : > { %v2836_v29 = vpop.permute.xlu1 %2835  ;;  %v2455_v27 = vpop.permute.xlu0 %2454  ;;  %4204 = vmatprep.subr.msk.bf16.mxu0 %vm4202_vm8, %v5291_v20  ;;  %2591 = vmatprep.mubr.bf16.mxu0 %v4530_v0  ;;  %vm5742_vm14 = vmmov %vm5738_vm1  ;;  %vm5744_vm8 = vcmask 1031168  }
 0x3b1   : > { %v2462_v12 = vsel %vm5739_vm6, %v2453_v57, %v2455_v27  ;;  %vm5743_vm5 = vmmov %vm5738_vm1 }
 0x3b2   : > { %4302 = vmatpush3.bf16.msra.mxu1 %v2462_v12  ;;  %vm5745_vm1 = vmmov %vm5744_vm8 }
 0x3b3   : > { %4210 = vmatprep.subr.msk.bf16.mxu1 %vm4208_vm7, %v5341_v37  ;;  %vm5746_vm15 = vmmov %vm5745_vm1 }
 0x3b4   : > { %v2832_v13 = vpop.permute.xlu1 %2831  ;;  %v2838_v49 = vpop.permute.xlu0 %2837  ;;  %vm5747_vm9 = vmmov %vm5741_vm3 }
 0x3b5   : > { %4304 = vmatmul.mubr.msk.bf16.vlgmr.msra.gmra.mrb[44].mxu1 %vm5740_vm13, %v4515_v54  ;;  %vm5748_vm7 = vmmov %vm5745_vm1 }
 0x3b6   : > { %4136 = vmatmul.mubr.msk.bf16.vlgmr.msra.gmra.mrb[20].mxu0 %vm5741_vm3, %v4515_v54  ;;  %4213 = vmatpush1.bf16.msk.msra.mxu1 %vm4211_vm11, %v5324_v62  ;;  %v2848_v62 = vsel %vm5744_vm8, %v2836_v29, %v2838_v49  ;;  %vm5749_vm6 = vmmov %vm5741_vm3 }
 0x3b7   : > { %4207 = vmatpush1.bf16.msk.msra.mxu0 %vm4205_vm0, %v5276_v15  ;;  %2726 = vmatprep.mubr.bf16.mxu1 %v4530_v0  ;;  %vm5750_vm11 = vmmov %vm5745_vm1 }
 0x3b8   : > { %v2830_v48 = vpop.permute.xlu1 %2829  ;;  %4216 = vmatprep.subr.msk.bf16.mxu0 %vm4214_vm2, %v5370_v40  ;;  %v2834_v19 = vpop.permute.xlu0 %2833  ;;  %4307 = vmatprep.subr.bf16.mxu1 %v4533_v28  ;;  %vm5751_vm0 = vmmov %vm5745_vm1 }
 0x3b9   : > { %2683 = vmatprep.mubr.bf16.mxu0 %v4530_v0  ;;  %v2846_v63 = vsel %vm5745_vm1, %v2832_v13, %v2834_v19  ;;  %v2847_v42 = vsel %vm5746_vm15, %v2834_v19, %v2836_v29  ;;  %v2845_v43 = vsel %vm5748_vm7, %v2830_v48, %v2832_v13  ;;  %vm5752_vm13 = vmmov %vm5741_vm3 }
 0x3ba   : > { %vm5753_vm2 = vmmov %vm5751_vm0 }
 0x3bb   : > { %vm5759_vm1 = vmmov %vm5741_vm3 }
 0x3bc   : > { %v2842_v20 = vpop.permute.xlu1 %2841  ;;  %v2840_v15 = vpop.permute.xlu0 %2839  ;;  %vm5762_vm7 = vmmov %vm5759_vm1 }
 0x3bd   : > { %4140 = vmatmul.mubr.msk.bf16.vlgmr.msra.gmra.mrb[40].mxu1 %vm5742_vm14, %v4516_v2  ;;  %v2850_v44 = vsel %vm5750_vm11, %v2840_v15, %v2842_v20  ;;  %v2849_v41 = vsel %vm5753_vm2, %v2838_v49, %v2840_v15  ;;  %vm5764_vm11 = vmmov %vm5759_vm1  ;;  %v4520_v49 = vld [vmem:[%s5640_s6 + $0x28] sm:$0xff]  }
 0x3be   : > { %4308 = vmatpush3.bf16.msk.msra.mxu1 %vm4220_vm4, %v5390_v25  ;;  %4139 = vmatmul.mubr.msk.bf16.vlgmr.msra.gmra.mrb[16].mxu0 %vm5743_vm5, %v4516_v2  ;;  %vm5754_vm4 = vcmask 1022976   ;;  %vm5757_vm5 = vmmov %vm5741_vm3 }
 0x3bf   : > { %4219 = vmatpush1.bf16.msk.msra.mxu0 %vm4217_vm12, %v5364_v8  ;;  %2905 = vmatprep.subr.bf16.mxu1 %v2848_v62  ;;  %vm5755_vm12 = vmmov %vm5754_vm4 }
 0x3c0   : > { %v3061_v34 = vpop.permute.xlu1 %3060  ;;  %2862 = vmatprep.subr.bf16.mxu0 %v2846_v63  ;;  %v2844_v37 = vpop.permute.xlu0 %2843  ;;  %4309 = vmatprep.mubr.msk.bf16.mxu1 %vm5680_vm10, %v4533_v28  ;;  %vm5756_vm14 = vmmov %vm5754_vm4 }
 0x3c1   : > { %2769 = vmatprep.mubr.bf16.mxu0 %v4530_v0  ;;  %v2851_v55 = vsel %vm5751_vm0, %v2842_v20, %v2844_v37  ;;  %vm5758_vm8 = vmmov %vm5754_vm4  ;;  %vm5765_vm0 = vcmask 1014784  }
 0x3c2   : > { %vm5760_vm15 = vmmov %vm5754_vm4 }
 0x3c3   : > { %vm5767_vm2 = vmmov %vm5765_vm0 }
 0x3c4   : > { %v3057_v9 = vpop.permute.xlu1 %3056  ;;  %v3063_v33 = vpop.permute.xlu0 %3062 }
 0x3c5   : > { %4310 = vmatmul.mubr.msk.bf16.vlgmr.msra.gmra.mrb[48].mxu1 %vm5747_vm9, %v4516_v2  ;;  %v3073_v59 = vsel %vm5754_vm4, %v3061_v34, %v3063_v33  ;;  %vm5761_vm9 = vmmov %vm5754_vm4 }
 0x3c6   : > { %2906 = vmatpush1.bf16.msra.mxu1 %v2847_v42  ;;  %4141 = vmatmul.mubr.msk.bf16.vlgmr.msra.gmra.mrb[20].mxu0 %vm5749_vm6, %v4516_v2  ;;  %vm5763_vm6 = vmmov %vm5754_vm4 }
 0x3c7   : > { %2863 = vmatpush1.bf16.msra.mxu0 %v2845_v43  ;;  %2937 = vmatprep.mubr.bf16.mxu1 %v4530_v0  ;;  %vm5769_vm4 = vmmov %vm5765_vm0  ;;  %v4521_v43 = vld [vmem:[%s5640_s6 + $0x30] sm:$0xff]  }
 0x3c8   : > { %v3055_v18 = vpop.permute.xlu1 %3054  ;;  %2948 = vmatprep.subr.bf16.mxu0 %v2850_v44  ;;  %v3059_v30 = vpop.permute.xlu0 %3058  ;;  %4313 = vmatprep.subr.bf16.mxu1 %v4533_v28 }
 0x3c9   : > { %2894 = vmatprep.mubr.bf16.mxu0 %v4530_v0  ;;  %v3071_v60 = vsel %vm5755_vm12, %v3057_v9, %v3059_v30  ;;  %v3072_v51 = vsel %vm5756_vm14, %v3059_v30, %v3061_v34  ;;  %v3070_v40 = vsel %vm5758_vm8, %v3055_v18, %v3057_v9  ;;  %vm5770_vm12 = vmmov %vm5759_vm1 }
 0x3ca   : > { %vm5771_vm14 = vmmov %vm5765_vm0 }
 0x3cb   : > { %vm5772_vm8 = vmmov %vm5765_vm0 }
 0x3cc   : > { %v3067_v38 = vpop.permute.xlu1 %3066  ;;  %v3065_v50 = vpop.permute.xlu0 %3064 }
 0x3cd   : > { %4147 = vmatmul.mubr.msk.bf16.vlgmr.msra.gmra.mrb[40].mxu1 %vm5752_vm13, %v4517_v4  ;;  %v3075_v45 = vsel %vm5760_vm15, %v3065_v50, %v3067_v38  ;;  %v3074_v23 = vsel %vm5763_vm6, %v3063_v33, %v3065_v50  ;;  %vm5766_vm13 = vmmov %vm5765_vm0 }
 0x3ce   : > { %4314 = vmatpush3.bf16.msra.mxu1 %v2851_v55  ;;  %4146 = vmatmul.mubr.msk.bf16.vlgmr.msra.gmra.mrb[16].mxu0 %vm5741_vm3, %v4517_v4  ;;  %vm5768_vm3 = vmmov %vm5759_vm1 }
 0x3cf   : > { %2949 = vmatpush1.bf16.msra.mxu0 %v2849_v41  ;;  %3130 = vmatprep.subr.bf16.mxu1 %v3073_v59  ;;  %vm5773_vm15 = vmmov %vm5765_vm0 }
 0x3d0   : > { %v3286_v36 = vpop.permute.xlu1 %3285  ;;  %3087 = vmatprep.subr.bf16.mxu0 %v3071_v60  ;;  %v3069_v11 = vpop.permute.xlu0 %3068  ;;  %4315 = vmatprep.mubr.msk.bf16.mxu1 %vm5680_vm10, %v4533_v28  ;;  %vm5776_vm6 = vmmov %vm5759_vm1 }
 0x3d1   : > { %2980 = vmatprep.mubr.bf16.mxu0 %v4530_v0  ;;  %v3076_v17 = vsel %vm5761_vm9, %v3067_v38, %v3069_v11  ;;  %vm5774_vm9 = vmmov %vm5759_vm1 }
 0x3d4   : > { %v3282_v8 = vpop.permute.xlu1 %3281  ;;  %v3288_v14 = vpop.permute.xlu0 %3287 }
 0x3d5   : > { %4316 = vmatmul.mubr.msk.bf16.vlgmr.msra.gmra.mrb[52].mxu1 %vm5757_vm5, %v4517_v4  ;;  %v3298_v21 = vsel %vm5765_vm0, %v3286_v36, %v3288_v14  ;;  %vm3520_vm5 = vcmask 1006592   ;;  %vm5777_vm0 = vmmov %vm5759_vm1 }
 0x3d6   : > { %3131 = vmatpush1.bf16.msra.mxu1 %v3072_v51  ;;  %4148 = vmatmul.mubr.msk.bf16.vlgmr.msra.gmra.mrb[20].mxu0 %vm5759_vm1, %v4517_v4 }
 0x3d7   : > { %3088 = vmatpush1.bf16.msra.mxu0 %v3070_v40  ;;  %3162 = vmatprep.mubr.bf16.mxu1 %v4530_v0 }
 0x3d8   : > { %v3280_v52 = vpop.permute.xlu1 %3279  ;;  %3173 = vmatprep.subr.bf16.mxu0 %v3075_v45  ;;  %v3284_v10 = vpop.permute.xlu0 %3283  ;;  %4319 = vmatprep.subr.bf16.mxu1 %v4533_v28 }
 0x3d9   : > { %3119 = vmatprep.mubr.bf16.mxu0 %v4530_v0  ;;  %v3296_v22 = vsel %vm5766_vm13, %v3282_v8, %v3284_v10  ;;  %v3297_v7 = vsel %vm5767_vm2, %v3284_v10, %v3286_v36  ;;  %v3295_v31 = vsel %vm5769_vm4, %v3280_v52, %v3282_v8  ;;  %vm5778_vm13 = vmmov %vm5777_vm0 }
 0x3da   : > { %vm5779_vm2 = vmmov %vm5777_vm0 }
 0x3db   : > { %vm5781_vm4 = vmmov %vm5777_vm0 }
 0x3dc   : > { %v3292_v5 = vpop.permute.xlu1 %3291  ;;  %v3290_v6 = vpop.permute.xlu0 %3289 }
 0x3dd   : > { %4154 = vmatmul.mubr.msk.bf16.vlgmr.msra.gmra.mrb[40].mxu1 %vm5762_vm7, %v4518_v61  ;;  %v3300_v32 = vsel %vm5771_vm14, %v3290_v6, %v3292_v5  ;;  %v3299_v54 = vsel %vm5773_vm15, %v3288_v14, %v3290_v6  ;;  %vm5775_vm7 = vmmov %vm5759_vm1 }
 0x3de   : > { %4320 = vmatpush3.bf16.msra.mxu1 %v3076_v17  ;;  %4153 = vmatmul.mubr.msk.bf16.vlgmr.msra.gmra.mrb[16].mxu0 %vm5764_vm11, %v4518_v61  ;;  %vm3746_vm11 = vcmask 998400   ;;  %vm5783_vm14 = vmmov %vm5777_vm0 }
 0x3df   : > { %3174 = vmatpush1.bf16.msra.mxu0 %v3074_v23  ;;  %3355 = vmatprep.subr.bf16.mxu1 %v3298_v21 }
 0x3e0   : > { %v3511_v25 = vpop.permute.xlu1 %3510  ;;  %3312 = vmatprep.subr.bf16.mxu0 %v3296_v22  ;;  %v3294_v53 = vpop.permute.xlu0 %3293  ;;  %4321 = vmatprep.mubr.msk.bf16.mxu1 %vm5680_vm10, %v4533_v28 }
 0x3e1   : > { %3205 = vmatprep.mubr.bf16.mxu0 %v4530_v0  ;;  %v3301_v47 = vsel %vm5772_vm8, %v3292_v5, %v3294_v53 }
 0x3e4   : > { %v3507_v58 = vpop.permute.xlu1 %3506  ;;  %v3513_v26 = vpop.permute.xlu0 %3512 }
 0x3e5   : > { %4322 = vmatmul.mubr.msk.bf16.vlgmr.msra.gmra.mrb[56].mxu1 %vm5768_vm3, %v4518_v61  ;;  %v3524_v57 = vsel %vm3520_vm5, %v3511_v25, %v3513_v26  ;;  %vm5780_vm3 = vmmov %vm5777_vm0 }
 0x3e6   : > { %3356 = vmatpush1.bf16.msra.mxu1 %v3297_v7  ;;  %4155 = vmatmul.mubr.msk.bf16.vlgmr.msra.gmra.mrb[20].mxu0 %vm5770_vm12, %v4518_v61  ;;  %vm5782_vm12 = vmmov %vm5777_vm0 }
 0x3e7   : > { %3313 = vmatpush1.bf16.msra.mxu0 %v3295_v31  ;;  %3387 = vmatprep.mubr.bf16.mxu1 %v4530_v0 }
 0x3e8   : > { %v3505_v46 = vpop.permute.xlu1 %3504  ;;  %3398 = vmatprep.subr.bf16.mxu0 %v3300_v32  ;;  %v3509_v35 = vpop.permute.xlu0 %3508  ;;  %4325 = vmatprep.subr.bf16.mxu1 %v4533_v28 }
 0x3e9   : > { %3344 = vmatprep.mubr.bf16.mxu0 %v4530_v0  ;;  %v3522_v16 = vsel %vm3520_vm5, %v3507_v58, %v3509_v35  ;;  %v3523_v29 = vsel %vm3520_vm5, %v3509_v35, %v3511_v25  ;;  %v3521_v27 = vsel %vm3520_vm5, %v3505_v46, %v3507_v58 }
 0x3ec   : > { %v3515_v24 = vpop.permute.xlu0 %3514  ;;  %v3517_v56 = vpop.permute.xlu1 %3516 }
 0x3ed   : > { %4161 = vmatmul.mubr.msk.bf16.vlgmr.msra.gmra.mrb[40].mxu1 %vm5759_vm1, %v4519_v39  ;;  %v3526_v13 = vsel %vm3520_vm5, %v3515_v24, %v3517_v56  ;;  %v3525_v20 = vsel %vm3520_vm5, %v3513_v26, %v3515_v24 }
 0x3ee   : > { %4326 = vmatpush3.bf16.msra.mxu1 %v3301_v47  ;;  %4160 = vmatmul.mubr.msk.bf16.vlgmr.msra.gmra.mrb[16].mxu0 %vm5774_vm9, %v4519_v39 }
 0x3ef   : > { %3399 = vmatpush1.bf16.msra.mxu0 %v3299_v54  ;;  %3581 = vmatprep.subr.bf16.mxu1 %v3524_v57 }
 0x3f0   : > { %3538 = vmatprep.subr.bf16.mxu0 %v3522_v16  ;;  %v3519_v1 = vpop.permute.xlu0 %3518  ;;  %4327 = vmatprep.mubr.msk.bf16.mxu1 %vm5680_vm10, %v4533_v28  ;;  %v3737_v3 = vpop.permute.xlu1 %3736 }
 0x3f1   : > { %3430 = vmatprep.mubr.bf16.mxu0 %v4530_v0  ;;  %v3527_v2 = vsel %vm3520_vm5, %v3517_v56, %v3519_v1  ;;  %vm5784_vm5 = vmmov %vm5777_vm0 }
 0x3f4   : > { %v3739_v12 = vpop.permute.xlu0 %3738  ;;  %v3733_v48 = vpop.permute.xlu1 %3732 }
 0x3f5   : > { %4328 = vmatmul.mubr.msk.bf16.vlgmr.msra.gmra.mrb[60].mxu1 %vm5775_vm7, %v4519_v39  ;;  %v3750_v15 = vsel %vm3746_vm11, %v3737_v3, %v3739_v12 }
 0x3f6   : > { %3582 = vmatpush1.bf16.msra.mxu1 %v3523_v29  ;;  %4162 = vmatmul.mubr.msk.bf16.vlgmr.msra.gmra.mrb[20].mxu0 %vm5776_vm6, %v4519_v39 }
 0x3f7   : > { %3539 = vmatpush1.bf16.msra.mxu0 %v3521_v27  ;;  %3613 = vmatprep.mubr.bf16.mxu1 %v4530_v0 }
 0x3f8   : > { %3624 = vmatprep.subr.bf16.mxu0 %v3526_v13  ;;  %4331 = vmatprep.subr.bf16.mxu1 %v4533_v28  ;;  %v3735_v19 = vpop.permute.xlu0 %3734  ;;  %v3731_v63 = vpop.permute.xlu1 %3730 }
 0x3f9   : > { %3570 = vmatprep.mubr.bf16.mxu0 %v4530_v0  ;;  %v3748_v62 = vsel %vm3746_vm11, %v3733_v48, %v3735_v19  ;;  %v3749_v37 = vsel %vm3746_vm11, %v3735_v19, %v3737_v3  ;;  %v3747_v9 = vsel %vm3746_vm11, %v3731_v63, %v3733_v48 }
 0x3fc   : > { %v3741_v34 = vpop.permute.xlu0 %3740  ;;  %v3743_v33 = vpop.permute.xlu1 %3742 }
 0x3fd   : > { %4168 = vmatmul.mubr.msk.bf16.vlgmr.msra.gmra.mrb[40].mxu1 %vm5777_vm0, %v4520_v49  ;;  %v3752_v42 = vsel %vm3746_vm11, %v3741_v34, %v3743_v33  ;;  %v3751_v30 = vsel %vm3746_vm11, %v3739_v12, %v3741_v34 }
 0x3fe   : > { %4332 = vmatpush3.bf16.msra.mxu1 %v3527_v2  ;;  %4167 = vmatmul.mubr.msk.bf16.vlgmr.msra.gmra.mrb[16].mxu0 %vm5778_vm13, %v4520_v49 }
 0x3ff   : > { %3625 = vmatpush1.bf16.msra.mxu0 %v3525_v20  ;;  %3807 = vmatprep.subr.bf16.mxu1 %v3750_v15 }
 0x400   : > { %3764 = vmatprep.subr.bf16.mxu0 %v3748_v62  ;;  %4333 = vmatprep.mubr.msk.bf16.mxu1 %vm5680_vm10, %v4533_v28  ;;  %v3745_v44 = vpop.permute.xlu0 %3744 }
 0x401   : > { %3656 = vmatprep.mubr.bf16.mxu0 %v4530_v0  ;;  %v3753_v18 = vsel %vm3746_vm11, %v3743_v33, %v3745_v44 }
 0x405   : > { %4334 = vmatmul.mubr.msk.bf16.vlgmr.msra.gmra.mrb[64].mxu1 %vm5779_vm2, %v4520_v49 }
 0x406   : > { %3808 = vmatpush1.bf16.msra.mxu1 %v3749_v37  ;;  %4169 = vmatmul.mubr.msk.bf16.vlgmr.msra.gmra.mrb[20].mxu0 %vm5780_vm3, %v4520_v49 }
 0x407   : > { %3765 = vmatpush1.bf16.msra.mxu0 %v3747_v9  ;;  %3839 = vmatprep.mubr.bf16.mxu1 %v4530_v0 }
 0x408   : > { %3850 = vmatprep.subr.bf16.mxu0 %v3752_v42  ;;  %4337 = vmatprep.subr.bf16.mxu1 %v4533_v28 }
 0x409   : > { %3796 = vmatprep.mubr.bf16.mxu0 %v4530_v0 }
 0x40d   : > { %4175 = vmatmul.mubr.msk.bf16.vlgmr.msra.gmra.mrb[40].mxu1 %vm5781_vm4, %v4521_v43  ;;  %v3953_v39 = vpop.permute.xlu1 %3952 }
 0x40e   : > { %4338 = vmatpush3.bf16.msra.mxu1 %v3753_v18  ;;  %4174 = vmatmul.mubr.msk.bf16.vlgmr.msra.gmra.mrb[16].mxu0 %vm5782_vm12, %v4521_v43 }
 0x40f   : > { %3851 = vmatpush1.bf16.msra.mxu0 %v3751_v30  ;;  %4339 = vmatprep.mubr.msk.bf16.mxu1 %vm5680_vm10, %v4533_v28 }
 0x410   : > { %3882 = vmatprep.mubr.bf16.mxu0 %v4530_v0 }
 0x411   : > { %v3958_v24 = vpop.permute.xlu0 %3957 }
 0x415   : > { %4340 = vmatmul.mubr.msk.bf16.vlgmr.msra.gmra.mrb[68].mxu1 %vm5783_vm14, %v4521_v43 }
 0x416   : > { %4176 = vmatmul.mubr.msk.bf16.vlgmr.msra.gmra.mrb[20].mxu0 %vm5784_vm5, %v4521_v43 }
 0x488   : > { %v2636_v4 = vpop.f32.mrb[44].mxu1 }
 0x489   : > { %v4305_v38 = vpop.f32.mrb[45].mxu1 }
 0x48a   : > { %v2639_v50 = vpop.f32.mrb[46].mxu1 }
 0x48b   : > { %v4306_v55 = vpop.f32.mrb[47].mxu1 }
 0x498   : > { %v2814_v41 = vpop.f32.mrb[48].mxu1 }
 0x499   : > { %v2815_v59 = vadd.f32 %v2814_v41, %v2636_v4  ;;  %v4311_v60 = vpop.f32.mrb[49].mxu1 }
 0x49a   : > { %v2817_v36 = vpop.f32.mrb[50].mxu1 }
 0x49b   : > { %v2818_v11 = vadd.f32 %v2817_v36, %v2639_v50  ;;  %v4312_v8 = vpop.f32.mrb[51].mxu1 }
 0x4a8   : > { %v3025_v14 = vpop.f32.mrb[52].mxu1 }
 0x4a9   : > { %v3038_v51 = vadd.f32 %v3025_v14, %v2815_v59  ;;  %v4317_v40 = vpop.f32.mrb[53].mxu1 }
 0x4aa   : > { %v3028_v28 = vpop.f32.mrb[54].mxu1 }
 0x4ab   : > { %v3045_v45 = vadd.f32 %v3028_v28, %v2818_v11  ;;  %v4318_v0 = vpop.f32.mrb[55].mxu1 }
 0x4b8   : > { %v3250_v52 = vpop.f32.mrb[56].mxu1 }
 0x4b9   : > { %v3263_v10 = vadd.f32 %v3250_v52, %v3038_v51  ;;  %v4323_v61 = vpop.f32.mrb[57].mxu1 }
 0x4ba   : > { %v3253_v5 = vpop.f32.mrb[58].mxu1 }
 0x4bb   : > { %v3270_v6 = vadd.f32 %v3253_v5, %v3045_v45  ;;  %v4324_v17 = vpop.f32.mrb[59].mxu1 }
 0x4c8   : > { %v3475_v23 = vpop.f32.mrb[60].mxu1 }
 0x4c9   : > { %v3488_v21 = vadd.f32 %v3475_v23, %v3263_v10  ;;  %v4329_v22 = vpop.f32.mrb[61].mxu1 }
 0x4ca   : > { %v3478_v25 = vpop.f32.mrb[62].mxu1 }
 0x4cb   : > { %v3495_v53 = vadd.f32 %v3478_v25, %v3270_v6  ;;  %v4330_v58 = vpop.f32.mrb[63].mxu1 }
 0x4d8   : > { %v3701_v26 = vpop.f32.mrb[64].mxu1 }
 0x4d9   : > { %v3714_v7 = vadd.f32 %v3701_v26, %v3488_v21  ;;  %v4335_v31 = vpop.f32.mrb[65].mxu1 }
 0x4da   : > { %v3704_v32 = vpop.f32.mrb[66].mxu1 }
 0x4db   : > { %v3721_v46 = vadd.f32 %v3704_v32, %v3495_v53  ;;  %v4336_v35 = vpop.f32.mrb[67].mxu1 }
 0x4e0   : > { %v3841_v47 = vpop.f32.mrb[40].mxu1 }
 0x4e1   : > { %v3962_v54 = vadd.f32 %v3953_v39, %v3841_v47  ;;  %v3798_v56 = vpop.f32.mrb[16].mxu0  ;;  %v3843_v57 = vpop.f32.mrb[41].mxu1 }
 0x4e2   : > { %v3960_v16 = vadd.f32 %v3953_v39, %v3798_v56  ;;  %v3963_v1 = vadd.f32 %v3953_v39, %v3843_v57  ;;  %v3800_v3 = vpop.f32.mrb[17].mxu0  ;;  %v3845_v29 = vpop.f32.mrb[42].mxu1 }
 0x4e3   : > { %3976 = vst [vmem:[%s5615_s24 + $0x10] sm:$0xff] %v3962_v54  ;;  %v3961_v27 = vadd.f32 %v3953_v39, %v3800_v3  ;;  %v3969_v12 = vadd.f32 %v3958_v24, %v3845_v29  ;;  %v3802_v13 = vpop.f32.mrb[18].mxu0  ;;  %v3847_v49 = vpop.f32.mrb[43].mxu1 }
 0x4e4   : > { %3974 = vst [vmem:[%s5615_s24] sm:$0xff] %v3960_v16  ;;  %3977 = vst [vmem:[%s5615_s24 + $0x18] sm:$0xff] %v3963_v1  ;;  %v3967_v48 = vadd.f32 %v3958_v24, %v3802_v13  ;;  %v3970_v19 = vadd.f32 %v3958_v24, %v3847_v49  ;;  %v3804_v2 = vpop.f32.mrb[19].mxu0 }
 0x4e5   : > { %3975 = vst [vmem:[%s5615_s24 + $0x8] sm:$0xff] %v3961_v27  ;;  %3983 = vst [vmem:[%s5615_s24 + $0x48] sm:$0xff] %v3969_v12  ;;  %v3968_v20 = vadd.f32 %v3958_v24, %v3804_v2 }
 0x4e6   : > { %3981 = vst [vmem:[%s5615_s24 + $0x38] sm:$0xff] %v3967_v48  ;;  %3984 = vst [vmem:[%s5615_s24 + $0x50] sm:$0xff] %v3970_v19 }
 0x4e7   : > { %3982 = vst [vmem:[%s5615_s24 + $0x40] sm:$0xff] %v3968_v20 }
 0x4e8   : > { %v3927_v15 = vpop.f32.mrb[68].mxu1 }
 0x4e9   : > { %v3940_v62 = vadd.f32 %v3927_v15, %v3714_v7  ;;  %v3884_v63 = vpop.f32.mrb[20].mxu0  ;;  %v4341_v34 = vpop.f32.mrb[69].mxu1 }
 0x4ea   : > { %v3964_v37 = vadd.f32 %v3953_v39, %v3884_v63  ;;  %v3886_v9 = vpop.f32.mrb[21].mxu0  ;;  %v3930_v33 = vpop.f32.mrb[70].mxu1 }
 0x4eb   : > { %v3966_v42 = vadd.f32 %v3953_v39, %v3940_v62  ;;  %v3965_v43 = vadd.f32 %v3953_v39, %v3886_v9  ;;  %v3947_v44 = vadd.f32 %v3930_v33, %v3721_v46  ;;  %v3888_v18 = vpop.f32.mrb[22].mxu0  ;;  %v4342_v30 = vpop.f32.mrb[71].mxu1 }
 0x4ec   : > { %3978 = vst [vmem:[%s5615_s24 + $0x20] sm:$0xff] %v3964_v37  ;;  %v3971_v4 = vadd.f32 %v3958_v24, %v3888_v18  ;;  %v3890_v38 = vpop.f32.mrb[23].mxu0 }
 0x4ed   : > { %3980 = vst [vmem:[%s5615_s24 + $0x30] sm:$0xff] %v3966_v42  ;;  %3979 = vst [vmem:[%s5615_s24 + $0x28] sm:$0xff] %v3965_v43  ;;  %v3973_v50 = vadd.f32 %v3958_v24, %v3947_v44  ;;  %v3972_v55 = vadd.f32 %v3958_v24, %v3890_v38 }
 0x4ee   : > { %3985 = vst [vmem:[%s5615_s24 + $0x58] sm:$0xff] %v3971_v4 }
 0x4ef   : > { %3987 = vst [vmem:[%s5615_s24 + $0x68] sm:$0xff] %v3973_v50  ;;  %3986 = vst [vmem:[%s5615_s24 + $0x60] sm:$0xff] %v3972_v55 }
 0x4f0 PF: > { %s18_s27 = sadd.s32 1, %s4528_s27  }
 0x4f1   : > { %p15_p4 = scmp.ge.s32.totalorder %s18_s27, 4  }
 0x4f3   :  { %17 = sbr.rel (!%p15_p4) target bundleno = 1 (0x1), region = 97 }

</bundles_post_ra>
